<compile_context>
chip_gen: v5e
topology: v5e:2x2
jax: 0.10.0
libtpu: 0.0.40
codegen_flags: <defaults>
</compile_context>

<pallas_src>
import jax
import jax.numpy as jnp
from jax.experimental import pallas as pl
from jax.experimental.pallas import tpu as pltpu


def _fused_conv3_kernel(x_ref, ring_ref, w1_ref, b1_ref, w2_ref, b2_ref,
                        w3_ref, b3_ref, r0_ref, r1_ref, o_ref):
    # x_ref:    (1, cin, tm)  bf16, channel-major pixels (tm = spatial tile)
    # ring_ref: (1, tm)       int32 ring class per pixel: 0 / 1 outer rings, 2 rest
    # wK_ref:   (coutK, cinK) bf16 conv weights; bK_ref: (coutK, 1) f32
    # r0/r1:    (c3, 1)       f32 constants for output rings 0 and 1
    # o_ref:    (1, c3, tm)   f32
    x = x_ref[0]                                                   # (cin, tm) bf16
    h = jnp.dot(w1_ref[...], x, preferred_element_type=jnp.float32)
    h = jnp.maximum(h + b1_ref[...], 0.0)
    h = jnp.dot(w2_ref[...], h.astype(jnp.bfloat16),
                preferred_element_type=jnp.float32)
    h = jnp.maximum(h + b2_ref[...], 0.0)
    y = jnp.dot(w3_ref[...], h.astype(jnp.bfloat16),
                preferred_element_type=jnp.float32)
    y = jnp.maximum(y + b3_ref[...], 0.0)                         # (c3, tm) f32

    ring = ring_ref[...]                                          # (1, tm)
    y = jnp.where(ring == 1, r1_ref[...], y)                      # 2nd-outermost ring
    y = jnp.where(ring == 0, r0_ref[...], y)                      # outermost ring
    o_ref[0] = y.astype(o_ref.dtype)


def _choose_tm(sp):
    # Largest spatial tile (multiple of 128, capped at 1024 to stay well inside
    # the default scoped-VMEM limits on all generations) that still yields
    # >= 8 spatial grid steps, so the pipeline has depth to hide DMA and v7x's
    # two TensorCores each get >= 4 steps.  Per-step overhead (~0.35us) is
    # amortized by keeping the tile as large as that constraint allows.
    tm = 1024
    while tm > 128 and pl.cdiv(sp, tm) < 8:
        tm //= 2
    return tm


def fused_forward(x_nchw, params):
    """Reproduces Model.forward: 3x (1x1 conv, padding=1, ReLU), NCHW in/out."""
    (w1, b1), (w2, b2), (w3, b3) = params
    n, cin, h, w = x_nchw.shape
    c1, c2, c3 = w1.shape[0], w2.shape[0], w3.shape[0]
    hp, wp = h + 6, w + 6
    sp = hp * wp

    # Pad spatially by 3 once (stay NCHW throughout; no transposes), cast to
    # bf16 for MXU-native matmuls, flatten spatial dims.
    xp = jnp.pad(x_nchw.astype(jnp.bfloat16), ((0, 0), (0, 0), (3, 3), (3, 3)))
    xf = xp.reshape(n, cin, sp)

    # Ring class of every output pixel (spatial position only, shared over batch).
    ii = jnp.arange(hp, dtype=jnp.int32)
    jj = jnp.arange(wp, dtype=jnp.int32)
    ri = jnp.minimum(ii, hp - 1 - ii)[:, None]
    rj = jnp.minimum(jj, wp - 1 - jj)[None, :]
    ring = jnp.minimum(jnp.minimum(ri, rj), 2).reshape(1, sp)      # (1, sp) int32

    # Weights as bf16 LHS (already (cout, cin) — exactly what channel-major needs).
    w1b = jnp.asarray(w1, jnp.bfloat16)
    w2b = jnp.asarray(w2, jnp.bfloat16)
    w3b = jnp.asarray(w3, jnp.bfloat16)
    b1c = jnp.asarray(b1, jnp.float32).reshape(c1, 1)
    b2c = jnp.asarray(b2, jnp.float32).reshape(c2, 1)
    b3c = jnp.asarray(b3, jnp.float32).reshape(c3, 1)

    # Constants for the two outermost output rings (computed in f32).
    b2f = jnp.asarray(b2, jnp.float32)
    b3f = jnp.asarray(b3, jnp.float32)
    w3f = jnp.asarray(w3, jnp.float32)
    r0 = jnp.maximum(b3f, 0.0).reshape(c3, 1)
    r1 = jnp.maximum(w3f @ jnp.maximum(b2f, 0.0) + b3f, 0.0).reshape(c3, 1)

    tm = _choose_tm(sp)
    grid = (n, pl.cdiv(sp, tm))

    out = pl.pallas_call(
        _fused_conv3_kernel,
        out_shape=jax.ShapeDtypeStruct((n, c3, sp), jnp.float32),
        grid=grid,
        in_specs=[
            pl.BlockSpec((1, cin, tm), lambda b, s: (b, 0, s)),   # x tile
            pl.BlockSpec((1, tm), lambda b, s: (0, s)),           # ring row
            pl.BlockSpec((c1, cin), lambda b, s: (0, 0)),         # W1 (resident)
            pl.BlockSpec((c1, 1), lambda b, s: (0, 0)),           # b1
            pl.BlockSpec((c2, c1), lambda b, s: (0, 0)),          # W2
            pl.BlockSpec((c2, 1), lambda b, s: (0, 0)),           # b2
            pl.BlockSpec((c3, c2), lambda b, s: (0, 0)),          # W3
            pl.BlockSpec((c3, 1), lambda b, s: (0, 0)),           # b3
            pl.BlockSpec((c3, 1), lambda b, s: (0, 0)),           # r0
            pl.BlockSpec((c3, 1), lambda b, s: (0, 0)),           # r1
        ],
        out_specs=pl.BlockSpec((1, c3, tm), lambda b, s: (b, 0, s)),
        compiler_params=pltpu.CompilerParams(
            dimension_semantics=("parallel", "parallel")),
    )(xf, ring, w1b, b1c, w2b, b2c, w3b, b3c, r0, r1)

    # NCHW already — reshape is free (no transpose, no slice).
    return out.reshape(n, c3, hp, wp)


model_forward = jax.jit(fused_forward)


def _reference_forward(x_nchw, params):
    # Plain-JAX f32 reference: per-layer pad(1) + 1x1 conv + ReLU, NCHW.
    y = x_nchw.astype(jnp.float32)
    for w, b in params:
        y = jnp.pad(y, ((0, 0), (0, 0), (1, 1), (1, 1)))
        y = jnp.einsum("nchw,oc->nohw", y, jnp.asarray(w, jnp.float32))
        y = jnp.maximum(y + jnp.asarray(b, jnp.float32).reshape(1, -1, 1, 1), 0.0)
    return y


if __name__ == "__main__":
    key = jax.random.PRNGKey(0)
    kx, k1, k2, k3, kb1, kb2, kb3 = jax.random.split(key, 7)

    # Small shapes consistent with the module (conv1 requires Cin = 32).
    N, C, H, W = 2, 32, 16, 16
    x = jax.random.normal(kx, (N, C, H, W), jnp.float32)

    def init(kw, kb, cout, cin):
        w = jax.random.normal(kw, (cout, cin), jnp.float32) * (1.0 / cin) ** 0.5
        b = jax.random.normal(kb, (cout,), jnp.float32) * 0.1
        return w, b

    params = (
        init(k1, kb1, 64, 32),
        init(k2, kb2, 128, 64),
        init(k3, kb3, 256, 128),
    )

    out = model_forward(x, params)
    out = jax.block_until_ready(out)

    assert out.shape == (N, 256, H + 6, W + 6), out.shape

    ref = _reference_forward(x, params)
    # Tolerance reflects bf16 MXU operands with f32 accumulation (3 chained
    # matmuls, K up to 128); f32-operand path matches to ~1e-6.
    max_err = float(jnp.max(jnp.abs(out - ref)))
    assert jnp.allclose(out, ref, atol=3e-2, rtol=3e-2), max_err

    print("KERNEL_OK")
</pallas_src>

<mosaic_0001>
module attributes {stable_mosaic.version = 11 : i64} {
  func.func @_fused_conv3_kernel(%arg0: i32, %arg1: i32, %arg2: memref<1x32x128xbf16, #tpu.memory_space<vmem>>, %arg3: memref<1x128xi32, #tpu.memory_space<vmem>>, %arg4: memref<64x32xbf16, #tpu.memory_space<vmem>>, %arg5: memref<64x1xf32, #tpu.memory_space<vmem>>, %arg6: memref<128x64xbf16, #tpu.memory_space<vmem>>, %arg7: memref<128x1xf32, #tpu.memory_space<vmem>>, %arg8: memref<256x128xbf16, #tpu.memory_space<vmem>>, %arg9: memref<256x1xf32, #tpu.memory_space<vmem>>, %arg10: memref<256x1xf32, #tpu.memory_space<vmem>>, %arg11: memref<256x1xf32, #tpu.memory_space<vmem>>, %arg12: memref<1x256x128xf32, #tpu.memory_space<vmem>>) attributes {dimension_semantics = [#tpu.dimension_semantics<parallel>, #tpu.dimension_semantics<parallel>], iteration_bounds = array<i64: 2, 4>, scalar_prefetch = 0 : i64, scratch_operands = 0 : i64, tpu.core_type = #tpu.core_type<tc>, window_params = [{transform_indices = @transform_0, window_bounds = array<i64: 1, 32, 128>}, {transform_indices = @transform_1, window_bounds = array<i64: 1, 128>}, {pipeline_mode = #tpu.pipeline_mode<synchronous>, transform_indices = @transform_2, window_bounds = array<i64: 64, 32>}, {pipeline_mode = #tpu.pipeline_mode<synchronous>, transform_indices = @transform_3, window_bounds = array<i64: 64, 1>}, {pipeline_mode = #tpu.pipeline_mode<synchronous>, transform_indices = @transform_4, window_bounds = array<i64: 128, 64>}, {pipeline_mode = #tpu.pipeline_mode<synchronous>, transform_indices = @transform_5, window_bounds = array<i64: 128, 1>}, {pipeline_mode = #tpu.pipeline_mode<synchronous>, transform_indices = @transform_6, window_bounds = array<i64: 256, 128>}, {pipeline_mode = #tpu.pipeline_mode<synchronous>, transform_indices = @transform_7, window_bounds = array<i64: 256, 1>}, {pipeline_mode = #tpu.pipeline_mode<synchronous>, transform_indices = @transform_8, window_bounds = array<i64: 256, 1>}, {pipeline_mode = #tpu.pipeline_mode<synchronous>, transform_indices = @transform_9, window_bounds = array<i64: 256, 1>}, {transform_indices = @transform_10, window_bounds = array<i64: 1, 256, 128>}]} {
    %c0 = arith.constant 0 : index
    %c0_0 = arith.constant 0 : index
    %c0_1 = arith.constant 0 : index
    %0 = vector.load %arg2[%c0, %c0_0, %c0_1] : memref<1x32x128xbf16, #tpu.memory_space<vmem>>, vector<1x32x128xbf16>
    %1 = vector.shape_cast %0 : vector<1x32x128xbf16> to vector<32x128xbf16>
    %c0_2 = arith.constant 0 : index
    %c0_3 = arith.constant 0 : index
    %2 = vector.load %arg4[%c0_2, %c0_3] : memref<64x32xbf16, #tpu.memory_space<vmem>>, vector<64x32xbf16>
    %cst = arith.constant dense<0.000000e+00> : vector<64x128xf32>
    %3 = tpu.matmul %2, %1, %cst {dimension_numbers = #tpu.dot_dimension_numbers<[1], [0], [0], [1], [0, 0, 1, 1], [], []>} : vector<64x32xbf16>, vector<32x128xbf16>, vector<64x128xf32> -> vector<64x128xf32>
    %c0_4 = arith.constant 0 : index
    %c0_5 = arith.constant 0 : index
    %4 = vector.load %arg5[%c0_4, %c0_5] : memref<64x1xf32, #tpu.memory_space<vmem>>, vector<64x1xf32>
    %5 = vector.broadcast %4 : vector<64x1xf32> to vector<64x128xf32>
    %6 = arith.addf %3, %5 : vector<64x128xf32>
    %cst_6 = arith.constant 0.000000e+00 : f32
    %7 = vector.broadcast %cst_6 : f32 to vector<64x128xf32>
    %8 = arith.maximumf %6, %7 : vector<64x128xf32>
    %c0_7 = arith.constant 0 : index
    %c0_8 = arith.constant 0 : index
    %9 = vector.load %arg6[%c0_7, %c0_8] : memref<128x64xbf16, #tpu.memory_space<vmem>>, vector<128x64xbf16>
    %10 = arith.truncf %8 : vector<64x128xf32> to vector<64x128xbf16>
    %cst_9 = arith.constant dense<0.000000e+00> : vector<128x128xf32>
    %11 = tpu.matmul %9, %10, %cst_9 {dimension_numbers = #tpu.dot_dimension_numbers<[1], [0], [0], [1], [0, 0, 1, 1], [], []>} : vector<128x64xbf16>, vector<64x128xbf16>, vector<128x128xf32> -> vector<128x128xf32>
    %c0_10 = arith.constant 0 : index
    %c0_11 = arith.constant 0 : index
    %12 = vector.load %arg7[%c0_10, %c0_11] : memref<128x1xf32, #tpu.memory_space<vmem>>, vector<128x1xf32>
    %13 = vector.broadcast %12 : vector<128x1xf32> to vector<128x128xf32>
    %14 = arith.addf %11, %13 : vector<128x128xf32>
    %cst_12 = arith.constant 0.000000e+00 : f32
    %15 = vector.broadcast %cst_12 : f32 to vector<128x128xf32>
    %16 = arith.maximumf %14, %15 : vector<128x128xf32>
    %c0_13 = arith.constant 0 : index
    %c0_14 = arith.constant 0 : index
    %17 = vector.load %arg8[%c0_13, %c0_14] : memref<256x128xbf16, #tpu.memory_space<vmem>>, vector<256x128xbf16>
    %18 = arith.truncf %16 : vector<128x128xf32> to vector<128x128xbf16>
    %cst_15 = arith.constant dense<0.000000e+00> : vector<256x128xf32>
    %19 = tpu.matmul %17, %18, %cst_15 {dimension_numbers = #tpu.dot_dimension_numbers<[1], [0], [0], [1], [0, 0, 1, 1], [], []>} : vector<256x128xbf16>, vector<128x128xbf16>, vector<256x128xf32> -> vector<256x128xf32>
    %c0_16 = arith.constant 0 : index
    %c0_17 = arith.constant 0 : index
    %20 = vector.load %arg9[%c0_16, %c0_17] : memref<256x1xf32, #tpu.memory_space<vmem>>, vector<256x1xf32>
    %21 = vector.broadcast %20 : vector<256x1xf32> to vector<256x128xf32>
    %22 = arith.addf %19, %21 : vector<256x128xf32>
    %cst_18 = arith.constant 0.000000e+00 : f32
    %23 = vector.broadcast %cst_18 : f32 to vector<256x128xf32>
    %24 = arith.maximumf %22, %23 : vector<256x128xf32>
    %c0_19 = arith.constant 0 : index
    %c0_20 = arith.constant 0 : index
    %25 = vector.load %arg3[%c0_19, %c0_20] : memref<1x128xi32, #tpu.memory_space<vmem>>, vector<1x128xi32>
    %c1_i32 = arith.constant 1 : i32
    %26 = vector.broadcast %c1_i32 : i32 to vector<1x128xi32>
    %27 = arith.cmpi eq, %25, %26 : vector<1x128xi32>
    %c0_21 = arith.constant 0 : index
    %c0_22 = arith.constant 0 : index
    %28 = vector.load %arg11[%c0_21, %c0_22] : memref<256x1xf32, #tpu.memory_space<vmem>>, vector<256x1xf32>
    %29 = vector.shape_cast %27 : vector<1x128xi1> to vector<1x128xi1>
    %30 = vector.broadcast %29 : vector<1x128xi1> to vector<256x128xi1>
    %31 = vector.shape_cast %28 : vector<256x1xf32> to vector<256x1xf32>
    %32 = vector.broadcast %31 : vector<256x1xf32> to vector<256x128xf32>
    %33 = arith.select %30, %32, %24 : vector<256x128xi1>, vector<256x128xf32>
    %c0_i32 = arith.constant 0 : i32
    %34 = vector.broadcast %c0_i32 : i32 to vector<1x128xi32>
    %35 = arith.cmpi eq, %25, %34 : vector<1x128xi32>
    %c0_23 = arith.constant 0 : index
    %c0_24 = arith.constant 0 : index
    %36 = vector.load %arg10[%c0_23, %c0_24] : memref<256x1xf32, #tpu.memory_space<vmem>>, vector<256x1xf32>
    %37 = vector.shape_cast %35 : vector<1x128xi1> to vector<1x128xi1>
    %38 = vector.broadcast %37 : vector<1x128xi1> to vector<256x128xi1>
    %39 = vector.shape_cast %36 : vector<256x1xf32> to vector<256x1xf32>
    %40 = vector.broadcast %39 : vector<256x1xf32> to vector<256x128xf32>
    %41 = arith.select %38, %40, %33 : vector<256x128xi1>, vector<256x128xf32>
    %c0_25 = arith.constant 0 : index
    %c0_26 = arith.constant 0 : index
    %c0_27 = arith.constant 0 : index
    %42 = vector.load %arg12[%c0_25, %c0_26, %c0_27] : memref<1x256x128xf32, #tpu.memory_space<vmem>>, vector<1x256x128xf32>
    %43 = vector.shape_cast %42 : vector<1x256x128xf32> to vector<256x128xf32>
    %44 = vector.shape_cast %41 : vector<256x128xf32> to vector<1x256x128xf32>
    tpu.vector_store %arg12[%c0_25, %c0_26, %c0_27], %44 {strides = array<i32>} : memref<1x256x128xf32, #tpu.memory_space<vmem>>, vector<1x256x128xf32>,
    return
  }
  func.func @transform_0(%arg0: i32, %arg1: i32) -> (i32, i32, i32) {
    %c0_i32 = arith.constant 0 : i32
    %c0_i32_0 = arith.constant 0 : i32
    return %arg0, %c0_i32, %arg1 : i32, i32, i32
  }
  func.func @transform_1(%arg0: i32, %arg1: i32) -> (i32, i32) {
    %c0_i32 = arith.constant 0 : i32
    %c0_i32_0 = arith.constant 0 : i32
    return %c0_i32, %arg1 : i32, i32
  }
  func.func @transform_2(%arg0: i32, %arg1: i32) -> (i32, i32) {
    %c0_i32 = arith.constant 0 : i32
    %c0_i32_0 = arith.constant 0 : i32
    %c0_i32_1 = arith.constant 0 : i32
    return %c0_i32, %c0_i32_0 : i32, i32
  }
  func.func @transform_3(%arg0: i32, %arg1: i32) -> (i32, i32) {
    %c0_i32 = arith.constant 0 : i32
    %c0_i32_0 = arith.constant 0 : i32
    %c0_i32_1 = arith.constant 0 : i32
    return %c0_i32, %c0_i32_0 : i32, i32
  }
  func.func @transform_4(%arg0: i32, %arg1: i32) -> (i32, i32) {
    %c0_i32 = arith.constant 0 : i32
    %c0_i32_0 = arith.constant 0 : i32
    %c0_i32_1 = arith.constant 0 : i32
    return %c0_i32, %c0_i32_0 : i32, i32
  }
  func.func @transform_5(%arg0: i32, %arg1: i32) -> (i32, i32) {
    %c0_i32 = arith.constant 0 : i32
    %c0_i32_0 = arith.constant 0 : i32
    %c0_i32_1 = arith.constant 0 : i32
    return %c0_i32, %c0_i32_0 : i32, i32
  }
  func.func @transform_6(%arg0: i32, %arg1: i32) -> (i32, i32) {
    %c0_i32 = arith.constant 0 : i32
    %c0_i32_0 = arith.constant 0 : i32
    %c0_i32_1 = arith.constant 0 : i32
    return %c0_i32, %c0_i32_0 : i32, i32
  }
  func.func @transform_7(%arg0: i32, %arg1: i32) -> (i32, i32) {
    %c0_i32 = arith.constant 0 : i32
    %c0_i32_0 = arith.constant 0 : i32
    %c0_i32_1 = arith.constant 0 : i32
    return %c0_i32, %c0_i32_0 : i32, i32
  }
  func.func @transform_8(%arg0: i32, %arg1: i32) -> (i32, i32) {
    %c0_i32 = arith.constant 0 : i32
    %c0_i32_0 = arith.constant 0 : i32
    %c0_i32_1 = arith.constant 0 : i32
    return %c0_i32, %c0_i32_0 : i32, i32
  }
  func.func @transform_9(%arg0: i32, %arg1: i32) -> (i32, i32) {
    %c0_i32 = arith.constant 0 : i32
    %c0_i32_0 = arith.constant 0 : i32
    %c0_i32_1 = arith.constant 0 : i32
    return %c0_i32, %c0_i32_0 : i32, i32
  }
  func.func @transform_10(%arg0: i32, %arg1: i32) -> (i32, i32, i32) {
    %c0_i32 = arith.constant 0 : i32
    %c0_i32_0 = arith.constant 0 : i32
    return %arg0, %c0_i32, %arg1 : i32, i32, i32
  }
}

</mosaic_0001>

<bundles_post_ra>
// kernel: fused_forward.1
= control target key start
LH: loop header
LB: loop body
LE: loop exit
PB: predicated region body
PF: predicated region fallthrough
CT: control target
= control target key end

     0   :  { %s3465_s0 = inlined_call_operand.vmem [shape: bf16[2,32,484], index: 0, kind: input, shape index: {}]   ;;  %s3466_s1 = inlined_call_operand.vmem [shape: s32[1,484], index: 1, kind: input, shape index: {}]   ;;  %s3467_s2 = inlined_call_operand.vmem [shape: bf16[64,32], index: 2, kind: input, shape index: {}]   ;;  %s3468_s3 = inlined_call_operand.vmem [shape: f32[64,1], index: 3, kind: input, shape index: {}]   ;;  %s3469_s4 = inlined_call_operand.vmem [shape: bf16[128,64], index: 4, kind: input, shape index: {}]   ;;  %s3470_s5 = inlined_call_operand.vmem [shape: f32[128,1], index: 5, kind: input, shape index: {}]   ;;  %s3471_s6 = inlined_call_operand.vmem [shape: bf16[256,128], index: 6, kind: input, shape index: {}]   ;;  %s3472_s7 = inlined_call_operand.vmem [shape: f32[256,1], index: 7, kind: input, shape index: {}]   ;;  %s3473_s8 = inlined_call_operand.vmem [shape: f32[256,1], index: 8, kind: input, shape index: {}]   ;;  %s3474_s9 = inlined_call_operand.vmem [shape: f32[256,1], index: 9, kind: input, shape index: {}]   ;;  %s3475_s10 = inlined_call_operand.vmem [shape: f32[2,256,484], index: 10, kind: output, shape index: {}]  }
   0x1   :  { %3479 = sst [smem:[#allocation31_spill]] %s3475_s10 }
   0x2   :  { %s2382_s13 = smov 0   ;;  %s2384_s14 = smov 0  }
   0x3   :  { %s2386_s15 = smov 0   ;;  %s2388_s16 = smov 0  }
   0x4   :  { %s2390_s17 = smov 0   ;;  %s2392_s18 = smov 0  }
   0x5   :  { %s2394_s19 = smov 0  }
   0x6 LB: > { %s29_s20 = sadd.s32 1, %s2316_s17  ;;  %s32_s21 = sadd.s32 1, %s2320_s18  ;;  %s2324_s19 = sphi %s2394_s19, %s20_s19   ;;  %s2320_s18 = sphi %s2392_s18, %s3546_s18   ;;  %s2316_s17 = sphi %s2390_s17, %s3545_s17   ;;  %s2312_s16 = sphi %s2388_s16, %s3544_s16   ;;  %s2308_s15 = sphi %s2386_s15, %s3543_s15   ;;  %s2304_s14 = sphi %s2384_s14, %s3542_s14   ;;  %s2300_s13 = sphi %s2382_s13, %s3541_s13  }
   0x7   : > { %p30_p0 = scmp.ge.s32.totalorder %s29_s20, 4  ;;  %s2017_s22 = sadd.s32 4294967295, %s2324_s19  }
   0x8   : > { %p48_p1 = scmp.ne.s32.totalorder %s2304_s14, %s2300_s13  ;;  %p49_p2 = scmp.eq.s32.totalorder %s2324_s19, 0 }
   0x9   : > { %s3548_s20 = smov (%p30_p0, %s29_s20), 0  ;;  %s3550_s21 = smov (!%p30_p0, %s32_s21), %s2320_s18 }
   0xa   : > { %3480 = sst [smem:[#allocation4_spill]] %s3548_s20  ;;  %p34_p3 = scmp.ge.s32.totalorder %s3550_s21, 2 }
   0xb   : > { %p274_p4 = scmp.eq.s32.totalorder %s2017_s22, 7  ;;  %s37_s23 = ssub.s32 %s2316_s17, %s3548_s20 }
   0xc   : > { %p50_p5 = por %p49_p2, %p48_p1  ;;  %s3552_s21 = smov (%p34_p3, %s3550_s21), 0 }
   0xd   : > { %p2430_p6 = por %p274_p4, %p48_p1  ;;  %s36_s25 = ssub.s32 %s2320_s18, %s3552_s21 }
   0xe   : > { %s38_s26 = sor.u32 %s37_s23, %s36_s25  ;;  %s41_s27 = sadd.s32 1, %s2304_s14 }
   0xf   : > { %p39_p7 = scmp.eq.s32.totalorder %s38_s26, 0  ;;  %p2020_p8 = scmp.ge.s32.totalorder %s2324_s19, 8 }
  0x11   : > { %s2438_s28 = scalar_select %p39_p7, %s2304_s14, %s41_s27  }
  0x12   : > { %320 = sbr.rel (%p2020_p8) target bundleno = 33 (0x21), region = 48 }
  0x17   : > { %323 = sbr.rel (!%p50_p5) target bundleno = 33 (0x21), region = 52  ;;  %s325_s29 = sand.u32 (%p50_p5), 1, %s2304_s14  }
  0x18   : > { %s2022_s30 = sshll.u32 (%p50_p5), %s2320_s18, 4  ;;  %s2021_s11 = sshll.u32 (%p50_p5), %s325_s29, 4 }
  0x19   : > { %s329_s12 = sadd.s32 (%p50_p5), %s2316_s17, %s2022_s30  ;;  %s327_s25 = scalar_lea.vmem (%p50_p5), [#allocation2], %s2021_s11 }
  0x1a   : > { %s2023_s22 = sshll.u32 (%p50_p5), %s329_s12, 2 }
  0x1b   : > { %s331_s23 = scalar_lea.vmem (%p50_p5), %s3465_s0, %s2023_s22 }
  0x1c   : > { %v348_v0 = vld [vmem:[%s331_s23] sm:$0xf]  ;;  %v350_v1 = vld [vmem:[%s331_s23 + $0x10] sm:$0xf] }
  0x1d   : > { %v352_v2 = vld [vmem:[%s331_s23 + $0x20] sm:$0xf]  ;;  %349 = vst [vmem:[%s327_s25] sm:$0xf] %v348_v0  ;;  %v354_v3 = vld [vmem:[%s331_s23 + $0x30] sm:$0xf] }
  0x1e   : > { %351 = vst [vmem:[%s327_s25 + $0x4] sm:$0xf] %v350_v1 }
  0x1f   : > { %353 = vst [vmem:[%s327_s25 + $0x8] sm:$0xf] %v352_v2 }
  0x20   : > { %355 = vst [vmem:[%s327_s25 + $0xc] sm:$0xf] %v354_v3 }
  0x21 PF: > { %p2024_p9 = scmp.ge.s32.totalorder %s2324_s19, 1  ;;  %p392_p10 = scmp.lt.s32.totalorder %s2324_s19, 9 }
  0x23   : > { %p393_p11 = pnand %p2024_p9, %p392_p10 }
  0x25   : > { %396 = sbr.rel (%p393_p11) target bundleno = 792 (0x318), region = 97 }
  0x2a   : > { %v458_v4 = vld [vmem:[%s3468_s3 + $0x20] sm:$0xff]  ;;  %v456_v5 = vld [vmem:[%s3468_s3 + $0x10] sm:$0xff]  ;;  %s399_s11 = sand.u32 1, %s2300_s13   ;;  %v3477_v7 = vmov 0   ;;  %v459_v10 = vld [vmem:[%s3468_s3 + $0x28] sm:$0xff]  ;;  %vm534_vm0 = vcmask 261120  }
  0x2b   : > { %v454_v6 = vld [vmem:[%s3468_s3] sm:$0xff]  ;;  %2269 = vset.pattern.permute.xlu2 %v3477_v7  ;;  %2268 = vset.pattern.permute.xlu1 %v3477_v7  ;;  %s2025_s12 = sshll.u32 %s399_s11, 4  ;;  %v457_v11 = vld [vmem:[%s3468_s3 + $0x18] sm:$0xff]  ;;  %v455_v12 = vld [vmem:[%s3468_s3 + $0x8] sm:$0xff]  ;;  %vm740_vm1 = vcmask 523264   ;;  %p438_p12 = scmp.lt.s32.totalorder %s2308_s15, 3 }
  0x2c   : > { %2267 = vset.pattern.permute.xlu0 %v3477_v7  ;;  %484 = vperm.xlu2 %2269, %v458_v4   ;;  %s401_s22 = scalar_lea.vmem [#allocation2], %s2025_s12  ;;  %v2166_v13 = vld [vmem:[%s3467_s2] sm:$0xff]  ;;  %v461_v15 = vld [vmem:[%s3468_s3 + $0x38] sm:$0xff]  ;;  %v460_v16 = vld [vmem:[%s3468_s3 + $0x30] sm:$0xff]  ;;  %s2026_s20 = sshll.u32 %s399_s11, 8 }
  0x2d   : > { %474 = vperm.xlu1 %2268, %v456_v5   ;;  %464 = vperm.xlu0 %2267, %v454_v6   ;;  %v2165_v8 = vld [vmem:[%s401_s22 + $0x8] sm:$0xff]  ;;  %v2164_v9 = vld [vmem:[%s401_s22] sm:$0xff]  ;;  %s439_s23 = scalar_select %p438_p12, %s2308_s15, 3 }
  0x2e   : > { %553 = vmatpush.bf16.msra.mxu0 %v2165_v8  ;;  %v604_v14 = vld [vmem:[%s3470_s5] sm:$0xff]  ;;  %v607_v17 = vld [vmem:[%s3470_s5 + $0x18] sm:$0xff]  ;;  %v606_v18 = vld [vmem:[%s3470_s5 + $0x10] sm:$0xff]  ;;  %s3130_s13 = scalar_lea.vmem [#allocation3], %s2026_s20  ;;  %s2160_s11 = sshll.u32 (%p2430_p6), %s2312_s16, 7 }
  0x2f   : > { %v605_v19 = vld [vmem:[%s3470_s5 + $0x8] sm:$0xff]  ;;  %v610_v21 = vld [vmem:[%s3470_s5 + $0x30] sm:$0xff]  ;;  %v608_v23 = vld [vmem:[%s3470_s5 + $0x20] sm:$0xff]  ;;  %s440_s10 = scalar_lea.vmem %s3466_s1, %s439_s23  ;;  %s1776_s27 = sadd.s32 (%p2430_p6), %s2308_s15, %s2160_s11 }
  0x30   : > { %v2167_v20 = vld [vmem:[%s3467_s2 + $0x8] sm:$0xff]  ;;  %v612_v25 = vld [vmem:[%s3470_s5 + $0x40] sm:$0xff]  ;;  %v611_v26 = vld [vmem:[%s3470_s5 + $0x38] sm:$0xff]  ;;  %s2161_s29 = sshll.u32 (%p2430_p6), %s1776_s27, 3  ;;  %s3539_s24 = sld [smem:[#allocation31_spill]] (%p2430_p6) }
  0x31   : > { %v609_v22 = vld [vmem:[%s3470_s5 + $0x28] sm:$0xff]  ;;  %v2168_v27 = vld [vmem:[%s3467_s2 + $0x10] sm:$0xff]  ;;  %v616_v28 = vld [vmem:[%s3470_s5 + $0x60] sm:$0xff] }
  0x32   : > { %554 = vmatpush.bf16.msra.mxu0 %v2164_v9  ;;  %v613_v24 = vld [vmem:[%s3470_s5 + $0x48] sm:$0xff]  ;;  %v615_v29 = vld [vmem:[%s3470_s5 + $0x58] sm:$0xff]  ;;  %v614_v30 = vld [vmem:[%s3470_s5 + $0x50] sm:$0xff] }
  0x33   : > { %v619_v31 = vld [vmem:[%s3470_s5 + $0x78] sm:$0xff]  ;;  %v618_v32 = vld [vmem:[%s3470_s5 + $0x70] sm:$0xff]  ;;  %v617_v33 = vld [vmem:[%s3470_s5 + $0x68] sm:$0xff] }
  0x34   : > { %489 = vperm.xlu2 %2269, %v459_v10   ;;  %v2169_v34 = vld [vmem:[%s3467_s2 + $0x18] sm:$0xff]  ;;  %v872_v35 = vld [vmem:[%s3472_s7 + $0x10] sm:$0xff]  ;;  %v871_v36 = vld [vmem:[%s3472_s7 + $0x8] sm:$0xff] }
  0x35   : > { %479 = vperm.xlu1 %2268, %v457_v11   ;;  %469 = vperm.xlu0 %2267, %v455_v12   ;;  %v870_v37 = vld [vmem:[%s3472_s7] sm:$0xff]  ;;  %v875_v38 = vld [vmem:[%s3472_s7 + $0x28] sm:$0xff]  ;;  %v873_v40 = vld [vmem:[%s3472_s7 + $0x18] sm:$0xff] }
  0x36   : > { %2051 = vmatmul.msk.bf16.vlgmr.msra.gmra.mxu0 %vm534_vm0, %v2166_v13  ;;  %v874_v39 = vld [vmem:[%s3472_s7 + $0x20] sm:$0xff]  ;;  %v877_v42 = vld [vmem:[%s3472_s7 + $0x38] sm:$0xff]  ;;  %v876_v43 = vld [vmem:[%s3472_s7 + $0x30] sm:$0xff]  ;;  %s3380_s22 = scalar_lea.vmem (%p2430_p6), %s3539_s24, %s2161_s29 }
  0x37   : > { %v878_v41 = vld [vmem:[%s3472_s7 + $0x40] sm:$0xff]  ;;  %v881_v44 = vld [vmem:[%s3472_s7 + $0x58] sm:$0xff]  ;;  %v880_v45 = vld [vmem:[%s3472_s7 + $0x50] sm:$0xff] }
  0x38   : > { %v879_v46 = vld [vmem:[%s3472_s7 + $0x48] sm:$0xff]  ;;  %v884_v47 = vld [vmem:[%s3472_s7 + $0x70] sm:$0xff]  ;;  %v882_v49 = vld [vmem:[%s3472_s7 + $0x60] sm:$0xff] }
  0x39   : > { %v883_v48 = vld [vmem:[%s3472_s7 + $0x68] sm:$0xff]  ;;  %v886_v51 = vld [vmem:[%s3472_s7 + $0x80] sm:$0xff]  ;;  %v885_v52 = vld [vmem:[%s3472_s7 + $0x78] sm:$0xff] }
  0x3a   : > { %v887_v50 = vld [vmem:[%s3472_s7 + $0x88] sm:$0xff]  ;;  %v890_v53 = vld [vmem:[%s3472_s7 + $0xa0] sm:$0xff]  ;;  %v889_v54 = vld [vmem:[%s3472_s7 + $0x98] sm:$0xff] }
  0x3b   : > { %v888_v55 = vld [vmem:[%s3472_s7 + $0x90] sm:$0xff]  ;;  %v893_v56 = vld [vmem:[%s3472_s7 + $0xb8] sm:$0xff]  ;;  %v891_v58 = vld [vmem:[%s3472_s7 + $0xa8] sm:$0xff] }
  0x3c   : > { %622 = vperm.xlu2 %2269, %v604_v14   ;;  %v892_v57 = vld [vmem:[%s3472_s7 + $0xb0] sm:$0xff]  ;;  %v895_v60 = vld [vmem:[%s3472_s7 + $0xc8] sm:$0xff]  ;;  %v894_v61 = vld [vmem:[%s3472_s7 + $0xc0] sm:$0xff] }
  0x3d   : > { %499 = vperm.xlu1 %2268, %v461_v15   ;;  %494 = vperm.xlu0 %2267, %v460_v16   ;;  %v896_v59 = vld [vmem:[%s3472_s7 + $0xd0] sm:$0xff]  ;;  %v899_v62 = vld [vmem:[%s3472_s7 + $0xe8] sm:$0xff]  ;;  %v898_v63 = vld [vmem:[%s3472_s7 + $0xe0] sm:$0xff] }
  0x3e   : > { %v897_v0 = vld [vmem:[%s3472_s7 + $0xd8] sm:$0xff]  ;;  %v1281_v2 = vld [vmem:[%s3474_s9] sm:$0xff]  ;;  %v900_v4 = vld [vmem:[%s3472_s7 + $0xf0] sm:$0xff] }
  0x3f   : > { %v901_v3 = vld [vmem:[%s3472_s7 + $0xf8] sm:$0xff]  ;;  %v1283_v8 = vld [vmem:[%s3474_s9 + $0x10] sm:$0xff]  ;;  %v1282_v9 = vld [vmem:[%s3474_s9 + $0x8] sm:$0xff] }
  0x40   : > { %v1284_v6 = vld [vmem:[%s3474_s9 + $0x18] sm:$0xff]  ;;  %v1287_v11 = vld [vmem:[%s3474_s9 + $0x30] sm:$0xff]  ;;  %v1286_v12 = vld [vmem:[%s3474_s9 + $0x28] sm:$0xff] }
  0x41   : > { %v1285_v13 = vld [vmem:[%s3474_s9 + $0x20] sm:$0xff]  ;;  %v1290_v15 = vld [vmem:[%s3474_s9 + $0x48] sm:$0xff] }
  0x42   : > { %v1289_v16 = vld [vmem:[%s3474_s9 + $0x40] sm:$0xff] }
  0x44   : > { %637 = vperm.xlu2 %2269, %v607_v17   ;;  %v1288_v17 = vld [vmem:[%s3474_s9 + $0x38] sm:$0xff] }
  0x45   : > { %632 = vperm.xlu1 %2268, %v606_v18   ;;  %627 = vperm.xlu0 %2267, %v605_v19  }
  0x46   : > { %2052 = vmatmul.msk.bf16.gmra.mxu0 %vm534_vm0, %v2167_v20 }
  0x4c   : > { %652 = vperm.xlu2 %2269, %v610_v21   ;;  %v1293_v21 = vld [vmem:[%s3474_s9 + $0x60] sm:$0xff] }
  0x4d   : > { %647 = vperm.xlu1 %2268, %v609_v22   ;;  %642 = vperm.xlu0 %2267, %v608_v23   ;;  %v1292_v22 = vld [vmem:[%s3474_s9 + $0x58] sm:$0xff]  ;;  %v1291_v23 = vld [vmem:[%s3474_s9 + $0x50] sm:$0xff] }
  0x54   : > { %667 = vperm.xlu2 %2269, %v613_v24  }
  0x55   : > { %662 = vperm.xlu1 %2268, %v612_v25   ;;  %657 = vperm.xlu0 %2267, %v611_v26  }
  0x56   : > { %2053 = vmatmul.msk.bf16.gmra.mxu0 %vm534_vm0, %v2168_v27  ;;  %v1296_v27 = vld [vmem:[%s3474_s9 + $0x78] sm:$0xff] }
  0x5c   : > { %682 = vperm.xlu2 %2269, %v616_v28  }
  0x5d   : > { %677 = vperm.xlu1 %2268, %v615_v29   ;;  %672 = vperm.xlu0 %2267, %v614_v30   ;;  %v1295_v29 = vld [vmem:[%s3474_s9 + $0x70] sm:$0xff]  ;;  %v1294_v30 = vld [vmem:[%s3474_s9 + $0x68] sm:$0xff] }
  0x64   : > { %697 = vperm.xlu2 %2269, %v619_v31  }
  0x65   : > { %692 = vperm.xlu1 %2268, %v618_v32   ;;  %687 = vperm.xlu0 %2267, %v617_v33   ;;  %v1299_v32 = vld [vmem:[%s3474_s9 + $0x90] sm:$0xff] }
  0x66   : > { %2054 = vmatmul.msk.bf16.gmra.mxu0 %vm534_vm0, %v2169_v34  ;;  %v1298_v34 = vld [vmem:[%s3474_s9 + $0x88] sm:$0xff] }
  0x6c   : > { %914 = vperm.xlu2 %2269, %v872_v35   ;;  %v1297_v35 = vld [vmem:[%s3474_s9 + $0x80] sm:$0xff] }
  0x6d   : > { %909 = vperm.xlu1 %2268, %v871_v36   ;;  %904 = vperm.xlu0 %2267, %v870_v37  }
  0x74   : > { %929 = vperm.xlu2 %2269, %v875_v38  }
  0x75   : > { %924 = vperm.xlu1 %2268, %v874_v39   ;;  %919 = vperm.xlu0 %2267, %v873_v40  }
  0x7c   : > { %944 = vperm.xlu2 %2269, %v878_v41  }
  0x7d   : > { %939 = vperm.xlu1 %2268, %v877_v42   ;;  %934 = vperm.xlu0 %2267, %v876_v43  }
  0x84   : > { %959 = vperm.xlu2 %2269, %v881_v44  }
  0x85   : > { %954 = vperm.xlu1 %2268, %v880_v45   ;;  %949 = vperm.xlu0 %2267, %v879_v46  }
  0x86   : > { %v485_v26 = vpop.permute.xlu2 %484 }
  0x8c   : > { %974 = vperm.xlu2 %2269, %v884_v47  }
  0x8d   : > { %969 = vperm.xlu1 %2268, %v883_v48   ;;  %964 = vperm.xlu0 %2267, %v882_v49   ;;  %v1302_v48 = vld [vmem:[%s3474_s9 + $0xa8] sm:$0xff]  ;;  %v1301_v49 = vld [vmem:[%s3474_s9 + $0xa0] sm:$0xff] }
  0x8e   : > { %v490_v36 = vpop.permute.xlu2 %489 }
  0x94   : > { %989 = vperm.xlu2 %2269, %v887_v50   ;;  %v1300_v50 = vld [vmem:[%s3474_s9 + $0x98] sm:$0xff] }
  0x95   : > { %984 = vperm.xlu1 %2268, %v886_v51   ;;  %979 = vperm.xlu0 %2267, %v885_v52  }
  0x9c   : > { %1004 = vperm.xlu2 %2269, %v890_v53  }
  0x9d   : > { %999 = vperm.xlu1 %2268, %v889_v54   ;;  %994 = vperm.xlu0 %2267, %v888_v55  }
  0x9f   : > { %v465_v19 = vpop.permute.xlu0 %464  ;;  %v475_v20 = vpop.permute.xlu1 %474 }
  0xa4   : > { %1019 = vperm.xlu2 %2269, %v893_v56  }
  0xa5   : > { %1014 = vperm.xlu1 %2268, %v892_v57   ;;  %1009 = vperm.xlu0 %2267, %v891_v58  }
  0xa7   : > { %v470_v25 = vpop.permute.xlu0 %469  ;;  %v480_v28 = vpop.permute.xlu1 %479 }
  0xac   : > { %1034 = vperm.xlu2 %2269, %v896_v59  }
  0xad   : > { %1029 = vperm.xlu1 %2268, %v895_v60   ;;  %1024 = vperm.xlu0 %2267, %v894_v61   ;;  %v1305_v60 = vld [vmem:[%s3474_s9 + $0xc0] sm:$0xff]  ;;  %v1304_v61 = vld [vmem:[%s3474_s9 + $0xb8] sm:$0xff] }
  0xaf   : > { %v495_v33 = vpop.permute.xlu0 %494  ;;  %v500_v38 = vpop.permute.xlu1 %499 }
  0xb3   : > { %v2633_v1 = vpop.f32.mrf.mxu0 }
  0xb4   : > { %1049 = vperm.xlu2 %2269, %v899_v62   ;;  %v557_v56 = vadd.f32 %v2633_v1, %v465_v19  ;;  %v1303_v62 = vld [vmem:[%s3474_s9 + $0xb0] sm:$0xff]  ;;  %v2170_v1 = vld [vmem:[%s3469_s4] sm:$0xff]  ;;  %v1514_v19 = vld [vmem:[%s3473_s8 + $0x28] sm:$0xff] }
  0xb5   : > { %1044 = vperm.xlu1 %2268, %v898_v63   ;;  %1039 = vperm.xlu0 %2267, %v897_v0  }
  0xb6   : > { %v576_v63 = vmax.f32 %v557_v56, 0.0 }
  0xbb   : > { %v2644_v5 = vpop.f32.mrf.mxu0 }
  0xbc   : > { %1318 = vperm.xlu2 %2269, %v1281_v2   ;;  %v559_v53 = vadd.f32 %v2644_v5, %v470_v25  ;;  %v1308_v2 = vld [vmem:[%s3474_s9 + $0xd8] sm:$0xff]  ;;  %v1311_v5 = vld [vmem:[%s3474_s9 + $0xf0] sm:$0xff]  ;;  %v1521_v25 = vld [vmem:[%s3473_s8 + $0x60] sm:$0xff] }
  0xbd   : > { %1059 = vperm.xlu1 %2268, %v901_v3   ;;  %1054 = vperm.xlu0 %2267, %v900_v4   ;;  %v1307_v3 = vld [vmem:[%s3474_s9 + $0xd0] sm:$0xff]  ;;  %v1306_v4 = vld [vmem:[%s3474_s9 + $0xc8] sm:$0xff] }
  0xbe   : > { %v577_v58 = vmax.f32 %v559_v53, 0.0 }
  0xc0   : > { %v600_v0 = vpack.c.bf16 %v577_v58, %v576_v63 }
  0xc3   : > { %v561_v10 = vpop.f32.mrf.mxu0 }
  0xc4   : > { %1333 = vperm.xlu2 %2269, %v1284_v6   ;;  %v562_v51 = vadd.f32 %v561_v10, %v475_v20  ;;  %v1310_v6 = vld [vmem:[%s3474_s9 + $0xe8] sm:$0xff]  ;;  %v1519_v20 = vld [vmem:[%s3473_s8 + $0x50] sm:$0xff] }
  0xc5   : > { %1328 = vperm.xlu1 %2268, %v1283_v8   ;;  %1323 = vperm.xlu0 %2267, %v1282_v9   ;;  %v1309_v8 = vld [vmem:[%s3474_s9 + $0xe0] sm:$0xff]  ;;  %v2171_v9 = vld [vmem:[%s3469_s4 + $0x8] sm:$0xff] }
  0xc6   : > { %v578_v57 = vmax.f32 %v562_v51, 0.0  ;;  %v1510_v10 = vld [vmem:[%s3473_s8 + $0x8] sm:$0xff]  ;;  %v2177_v51 = vld [vmem:[%s3469_s4 + $0x38] sm:$0xff] }
  0xcb   : > { %v563_v14 = vpop.f32.mrf.mxu0 }
  0xcc   : > { %1348 = vperm.xlu2 %2269, %v1287_v11   ;;  %v564_v45 = vadd.f32 %v563_v14, %v480_v28  ;;  %v1509_v11 = vld [vmem:[%s3473_s8] sm:$0xff]  ;;  %v1512_v14 = vld [vmem:[%s3473_s8 + $0x18] sm:$0xff] }
  0xcd   : > { %1343 = vperm.xlu1 %2268, %v1286_v12   ;;  %1338 = vperm.xlu0 %2267, %v1285_v13   ;;  %v1312_v12 = vld [vmem:[%s3474_s9 + $0xf8] sm:$0xff]  ;;  %v1513_v13 = vld [vmem:[%s3473_s8 + $0x20] sm:$0xff] }
  0xce   : > { %v579_v54 = vmax.f32 %v564_v45, 0.0  ;;  %v1524_v28 = vld [vmem:[%s3473_s8 + $0x78] sm:$0xff] }
  0xcf   : > { %v1540_v45 = vld [vmem:[%s3473_s8 + $0xf8] sm:$0xff] }
  0xd0   : > { %v601_v59 = vpack.c.bf16 %v579_v54, %v578_v57 }
  0xd3   : > { %v566_v18 = vpop.f32.mrf.mxu0 }
  0xd4   : > { %1363 = vperm.xlu2 %2269, %v1290_v15   ;;  %v567_v42 = vadd.f32 %v566_v18, %v485_v26  ;;  %v1511_v15 = vld [vmem:[%s3473_s8 + $0x10] sm:$0xff]  ;;  %v1520_v26 = vld [vmem:[%s3473_s8 + $0x58] sm:$0xff] }
  0xd5   : > { %1358 = vperm.xlu1 %2268, %v1289_v16   ;;  %1353 = vperm.xlu0 %2267, %v1288_v17   ;;  %v2172_v16 = vld [vmem:[%s3469_s4 + $0x10] sm:$0xff]  ;;  %v1516_v17 = vld [vmem:[%s3473_s8 + $0x38] sm:$0xff] }
  0xd6   : > { %v580_v52 = vmax.f32 %v567_v42, 0.0  ;;  %v1515_v18 = vld [vmem:[%s3473_s8 + $0x30] sm:$0xff]  ;;  %v1536_v42 = vld [vmem:[%s3473_s8 + $0xd8] sm:$0xff] }
  0xdb   : > { %v568_v24 = vpop.f32.mrf.mxu0 }
  0xdc   : > { %1378 = vperm.xlu2 %2269, %v1293_v21   ;;  %v569_v40 = vadd.f32 %v568_v24, %v490_v36  ;;  %v1518_v21 = vld [vmem:[%s3473_s8 + $0x48] sm:$0xff]  ;;  %v1529_v36 = vld [vmem:[%s3473_s8 + $0xa0] sm:$0xff] }
  0xdd   : > { %1373 = vperm.xlu1 %2268, %v1292_v22   ;;  %1368 = vperm.xlu0 %2267, %v1291_v23   ;;  %v1517_v22 = vld [vmem:[%s3473_s8 + $0x40] sm:$0xff]  ;;  %v2173_v23 = vld [vmem:[%s3469_s4 + $0x18] sm:$0xff]  ;;  %v1522_v24 = vld [vmem:[%s3473_s8 + $0x68] sm:$0xff] }
  0xde   : > { %v581_v46 = vmax.f32 %v569_v40, 0.0  ;;  %v1532_v40 = vld [vmem:[%s3473_s8 + $0xb8] sm:$0xff] }
  0xe0   : > { %v602_v55 = vpack.c.bf16 %v581_v46, %v580_v52  ;;  %v1539_v46 = vld [vmem:[%s3473_s8 + $0xf0] sm:$0xff] }
  0xe3   : > { %v571_v31 = vpop.f32.mrf.mxu0 }
  0xe4   : > { %1393 = vperm.xlu2 %2269, %v1296_v27   ;;  %v572_v37 = vadd.f32 %v571_v31, %v495_v33  ;;  %v1525_v27 = vld [vmem:[%s3473_s8 + $0x80] sm:$0xff]  ;;  %v1528_v31 = vld [vmem:[%s3473_s8 + $0x98] sm:$0xff]  ;;  %v1526_v33 = vld [vmem:[%s3473_s8 + $0x88] sm:$0xff] }
  0xe5   : > { %1388 = vperm.xlu1 %2268, %v1295_v29   ;;  %1383 = vperm.xlu0 %2267, %v1294_v30   ;;  %v1523_v29 = vld [vmem:[%s3473_s8 + $0x70] sm:$0xff]  ;;  %v2174_v30 = vld [vmem:[%s3469_s4 + $0x20] sm:$0xff] }
  0xe6   : > { %v582_v43 = vmax.f32 %v572_v37, 0.0  ;;  %v2175_v37 = vld [vmem:[%s3469_s4 + $0x28] sm:$0xff] }
  0xeb   : > { %v573_v39 = vpop.f32.mrf.mxu0 }
  0xec   : > { %1408 = vperm.xlu2 %2269, %v1299_v32   ;;  %v574_v41 = vadd.f32 %v573_v39, %v500_v38  ;;  %v1527_v32 = vld [vmem:[%s3473_s8 + $0x90] sm:$0xff]  ;;  %v1534_v38 = vld [vmem:[%s3473_s8 + $0xc8] sm:$0xff]  ;;  %v1533_v39 = vld [vmem:[%s3473_s8 + $0xc0] sm:$0xff] }
  0xed   : > { %1403 = vperm.xlu1 %2268, %v1298_v34   ;;  %1398 = vperm.xlu0 %2267, %v1297_v35   ;;  %v1531_v34 = vld [vmem:[%s3473_s8 + $0xb0] sm:$0xff]  ;;  %v1530_v35 = vld [vmem:[%s3473_s8 + $0xa8] sm:$0xff] }
  0xee   : > { %v583_v44 = vmax.f32 %v574_v41, 0.0  ;;  %v1537_v41 = vld [vmem:[%s3473_s8 + $0xe0] sm:$0xff] }
  0xf0   : > { %v603_v47 = vpack.c.bf16 %v583_v44, %v582_v43  ;;  %v1535_v43 = vld [vmem:[%s3473_s8 + $0xd0] sm:$0xff] }
  0xf1   : > { %v2176_v44 = vld [vmem:[%s3469_s4 + $0x30] sm:$0xff] }
  0xf2   : > { %769 = vmatpush.bf16.msra.mxu1 %v603_v47  ;;  %v1538_v47 = vld [vmem:[%s3473_s8 + $0xe8] sm:$0xff] }
  0xf4   : > { %1423 = vperm.xlu2 %2269, %v1302_v48   ;;  %v623_v48 = vpop.permute.xlu2 %622 }
  0xf5   : > { %1418 = vperm.xlu1 %2268, %v1301_v49   ;;  %1413 = vperm.xlu0 %2267, %v1300_v50   ;;  %v633_v49 = vpop.permute.xlu1 %632  ;;  %v628_v50 = vpop.permute.xlu0 %627 }
  0xf6   : > { %770 = vmatpush.bf16.msra.mxu1 %v602_v55 }
  0xfa   : > { %771 = vmatpush.bf16.msra.mxu1 %v601_v59 }
  0xfc   : > { %1438 = vperm.xlu2 %2269, %v1305_v60   ;;  %v638_v52 = vpop.permute.xlu2 %637 }
  0xfd   : > { %1433 = vperm.xlu1 %2268, %v1304_v61   ;;  %1428 = vperm.xlu0 %2267, %v1303_v62   ;;  %v648_v53 = vpop.permute.xlu1 %647  ;;  %v643_v54 = vpop.permute.xlu0 %642 }
  0xfe   : > { %772 = vmatpush.bf16.msra.mxu1 %v600_v0 }
 0x101   : > { %2087 = vmatmul.msk.bf16.vlgmr.msra.gmra.mxu1 %vm740_vm1, %v2170_v1 }
 0x104   : > { %1453 = vperm.xlu2 %2269, %v1308_v2   ;;  %v653_v55 = vpop.permute.xlu2 %652 }
 0x105   : > { %1448 = vperm.xlu1 %2268, %v1307_v3   ;;  %1443 = vperm.xlu0 %2267, %v1306_v4   ;;  %v663_v56 = vpop.permute.xlu1 %662  ;;  %v658_v58 = vpop.permute.xlu0 %657 }
 0x10c   : > { %1468 = vperm.xlu2 %2269, %v1311_v5   ;;  %v668_v59 = vpop.permute.xlu2 %667 }
 0x10d   : > { %1463 = vperm.xlu1 %2268, %v1310_v6   ;;  %1458 = vperm.xlu0 %2267, %v1309_v8   ;;  %v2869_v60 = vpop.permute.xlu1 %677  ;;  %v2871_v0 = vpop.permute.xlu0 %672 }
 0x111   : > { %2088 = vmatmul.msk.bf16.gmra.mxu1 %vm740_vm1, %v2171_v9 }
 0x114   : > { %1551 = vperm.xlu2 %2269, %v1510_v10   ;;  %v2873_v3 = vpop.permute.xlu2 %682 }
 0x115   : > { %1546 = vperm.xlu1 %2268, %v1509_v11   ;;  %1473 = vperm.xlu0 %2267, %v1312_v12   ;;  %v2877_v5 = vpop.permute.xlu1 %692  ;;  %v2879_v8 = vpop.permute.xlu0 %687 }
 0x11c   : > { %1566 = vperm.xlu2 %2269, %v1513_v13   ;;  %v2881_v9 = vpop.permute.xlu2 %697 }
 0x11d   : > { %1561 = vperm.xlu1 %2268, %v1512_v14   ;;  %1556 = vperm.xlu0 %2267, %v1511_v15   ;;  %v2883_v12 = vpop.permute.xlu1 %909 }
 0x121   : > { %2089 = vmatmul.msk.bf16.gmra.mxu1 %vm740_vm1, %v2172_v16 }
 0x124   : > { %1581 = vperm.xlu2 %2269, %v1516_v17   ;;  %v2887_v17 = vpop.permute.xlu0 %904 }
 0x125   : > { %1576 = vperm.xlu1 %2268, %v1515_v18   ;;  %1571 = vperm.xlu0 %2267, %v1514_v19   ;;  %v2889_v19 = vpop.permute.xlu2 %914 }
 0x12c   : > { %1596 = vperm.xlu2 %2269, %v1519_v20   ;;  %v2891_v20 = vpop.permute.xlu1 %924 }
 0x12d   : > { %1591 = vperm.xlu1 %2268, %v1518_v21   ;;  %1586 = vperm.xlu0 %2267, %v1517_v22  }
 0x131   : > { %2090 = vmatmul.msk.bf16.gmra.mxu1 %vm740_vm1, %v2173_v23  ;;  %v2893_v23 = vpop.permute.xlu0 %919 }
 0x134   : > { %1611 = vperm.xlu2 %2269, %v1522_v24  }
 0x135   : > { %1606 = vperm.xlu1 %2268, %v1521_v25   ;;  %1601 = vperm.xlu0 %2267, %v1520_v26   ;;  %v2895_v25 = vpop.permute.xlu2 %929 }
 0x13c   : > { %1626 = vperm.xlu2 %2269, %v1525_v27  }
 0x13d   : > { %1621 = vperm.xlu1 %2268, %v1524_v28   ;;  %1616 = vperm.xlu0 %2267, %v1523_v29   ;;  %v2897_v28 = vpop.permute.xlu1 %939 }
 0x141   : > { %2091 = vmatmul.msk.bf16.gmra.mxu1 %vm740_vm1, %v2174_v30 }
 0x144   : > { %1641 = vperm.xlu2 %2269, %v1528_v31   ;;  %v2901_v31 = vpop.permute.xlu0 %934 }
 0x145   : > { %1636 = vperm.xlu1 %2268, %v1527_v32   ;;  %1631 = vperm.xlu0 %2267, %v1526_v33   ;;  %v2903_v32 = vpop.permute.xlu2 %944  ;;  %v2905_v33 = vpop.permute.xlu1 %954 }
 0x14c   : > { %1656 = vperm.xlu2 %2269, %v1531_v34  }
 0x14d   : > { %1651 = vperm.xlu1 %2268, %v1530_v35   ;;  %1646 = vperm.xlu0 %2267, %v1529_v36  }
 0x151   : > { %2092 = vmatmul.msk.bf16.gmra.mxu1 %vm740_vm1, %v2175_v37 }
 0x154   : > { %1671 = vperm.xlu2 %2269, %v1534_v38  }
 0x155   : > { %1666 = vperm.xlu1 %2268, %v1533_v39   ;;  %1661 = vperm.xlu0 %2267, %v1532_v40   ;;  %v2907_v39 = vpop.permute.xlu0 %949 }
 0x15c   : > { %1686 = vperm.xlu2 %2269, %v1537_v41   ;;  %v2911_v41 = vpop.permute.xlu2 %959 }
 0x15d   : > { %1681 = vperm.xlu1 %2268, %v1536_v42   ;;  %1676 = vperm.xlu0 %2267, %v1535_v43   ;;  %v2913_v43 = vpop.permute.xlu1 %969 }
 0x15e   : > { %3482 = vst [vmem:[#allocation5_spill] sm:$0xff] %v2913_v43 }
 0x161   : > { %2093 = vmatmul.msk.bf16.gmra.mxu1 %vm740_vm1, %v2176_v44  ;;  %v2915_v44 = vpop.permute.xlu0 %964 }
 0x164   : > { %1701 = vperm.xlu2 %2269, %v1540_v45  }
 0x165   : > { %1696 = vperm.xlu1 %2268, %v1539_v46   ;;  %1691 = vperm.xlu0 %2267, %v1538_v47   ;;  %v2917_v47 = vpop.permute.xlu2 %974 }
 0x166   : > { %3483 = vst [vmem:[#allocation6_spill] sm:$0xff] %v2917_v47 }
 0x171   : > { %2094 = vmatmul.msk.bf16.gmra.mxu1 %vm740_vm1, %v2177_v51 }
 0x17e   : > { %v774_v57 = vpop.f32.mrf.mxu1 }
 0x17f   : > { %v775_v61 = vadd.f32 %v774_v57, %v623_v48 }
 0x181   : > { %v814_v1 = vmax.f32 %v775_v61, 0.0 }
 0x186   : > { %v776_v62 = vpop.f32.mrf.mxu1 }
 0x187   : > { %v777_v63 = vadd.f32 %v776_v62, %v628_v50 }
 0x189   : > { %v815_v2 = vmax.f32 %v777_v63, 0.0 }
 0x18b   : > { %v2875_v4 = vpack.c.bf16 %v815_v2, %v814_v1 }
 0x18e   : > { %v779_v6 = vpop.f32.mrf.mxu1 }
 0x18f   : > { %v780_v10 = vadd.f32 %v779_v6, %v633_v49  ;;  %v2919_v49 = vpop.permute.xlu1 %984 }
 0x190   : > { %3484 = vst [vmem:[#allocation7_spill] sm:$0xff] %v2919_v49 }
 0x191   : > { %v816_v14 = vmax.f32 %v780_v10, 0.0 }
 0x196   : > { %v781_v11 = vpop.f32.mrf.mxu1 }
 0x197   : > { %v782_v13 = vadd.f32 %v781_v11, %v638_v52  ;;  %v2925_v57 = vpop.permute.xlu1 %999 }
 0x199   : > { %v817_v15 = vmax.f32 %v782_v13, 0.0 }
 0x19b   : > { %v2885_v16 = vpack.c.bf16 %v817_v15, %v816_v14 }
 0x19e   : > { %v784_v18 = vpop.f32.mrf.mxu1 }
 0x19f   : > { %v785_v21 = vadd.f32 %v784_v18, %v643_v54  ;;  %v2921_v54 = vpop.permute.xlu0 %979  ;;  %v2931_v62 = vpop.permute.xlu1 %1014 }
 0x1a0   : > { %3485 = vst [vmem:[#allocation8_spill] sm:$0xff] %v2921_v54 }
 0x1a1   : > { %v818_v26 = vmax.f32 %v785_v21, 0.0 }
 0x1a6   : > { %v786_v22 = vpop.f32.mrf.mxu1 }
 0x1a7   : > { %v787_v24 = vadd.f32 %v786_v22, %v648_v53  ;;  %v2927_v61 = vpop.permute.xlu0 %994  ;;  %v2937_v6 = vpop.permute.xlu1 %1029 }
 0x1a9   : > { %v819_v27 = vmax.f32 %v787_v24, 0.0 }
 0x1ab   : > { %v2899_v29 = vpack.c.bf16 %v819_v27, %v818_v26 }
 0x1ae   : > { %v789_v30 = vpop.f32.mrf.mxu1 }
 0x1af   : > { %v790_v34 = vadd.f32 %v789_v30, %v653_v55  ;;  %v2923_v55 = vpop.permute.xlu2 %989  ;;  %v2933_v63 = vpop.permute.xlu0 %1009 }
 0x1b0   : > { %3486 = vst [vmem:[#allocation9_spill] sm:$0xff] %v2923_v55  ;;  %v2943_v14 = vpop.permute.xlu1 %1044 }
 0x1b1   : > { %v820_v37 = vmax.f32 %v790_v34, 0.0  ;;  %3488 = vst [vmem:[#allocation11_spill] sm:$0xff] %v2943_v14 }
 0x1b6   : > { %v791_v35 = vpop.f32.mrf.mxu1 }
 0x1b7   : > { %v792_v36 = vadd.f32 %v791_v35, %v658_v58  ;;  %v2939_v10 = vpop.permute.xlu0 %1024 }
 0x1b8   : > { %v2953_v35 = vpop.permute.xlu1 %1059 }
 0x1b9   : > { %v821_v38 = vmax.f32 %v792_v36, 0.0  ;;  %3491 = vst [vmem:[#allocation14_spill] sm:$0xff] %v2953_v35  ;;  %v2185_v35 = vld [vmem:[%s3471_s6 + $0x38] sm:$0xff] }
 0x1bb   : > { %v2909_v40 = vpack.c.bf16 %v821_v38, %v820_v37 }
 0x1be   : > { %v794_v42 = vpop.f32.mrf.mxu1 }
 0x1bf   : > { %v795_v45 = vadd.f32 %v794_v42, %v663_v56  ;;  %v2929_v56 = vpop.permute.xlu2 %1004  ;;  %v2946_v21 = vpop.permute.xlu0 %1039 }
 0x1c0   : > { %3489 = vst [vmem:[#allocation12_spill] sm:$0xff] %v2946_v21 }
 0x1c1   : > { %v822_v50 = vmax.f32 %v795_v45, 0.0 }
 0x1c6   : > { %v796_v46 = vpop.f32.mrf.mxu1 }
 0x1c7   : > { %v797_v48 = vadd.f32 %v796_v46, %v668_v59  ;;  %v2935_v1 = vpop.permute.xlu2 %1019  ;;  %v2957_v45 = vpop.permute.xlu0 %1054 }
 0x1c8   : > { %3492 = vst [vmem:[#allocation15_spill] sm:$0xff] %v2957_v45 }
 0x1c9   : > { %v823_v51 = vmax.f32 %v797_v48, 0.0 }
 0x1cb   : > { %v866_v52 = vpack.c.bf16 %v823_v51, %v822_v50 }
 0x1ce   : > { %v799_v53 = vpop.f32.mrf.mxu1 }
 0x1cf   : > { %v2941_v13 = vpop.permute.xlu2 %1034 }
 0x1d0   : > { %3487 = vst [vmem:[#allocation10_spill] sm:$0xff] %v2941_v13 }
 0x1d6   : > { %v801_v58 = vpop.f32.mrf.mxu1 }
 0x1d7   : > { %v2950_v26 = vpop.permute.xlu2 %1049  ;;  %v802_v36 = vadd.f32 %v801_v58, %v2869_v60  ;;  %v2961_v60 = vpop.permute.xlu1 %1328  ;;  %v2180_v58 = vld [vmem:[%s3471_s6 + $0x10] sm:$0xff] }
 0x1d8   : > { %3490 = vst [vmem:[#allocation13_spill] sm:$0xff] %v2950_v26 }
 0x1de   : > { %v804_v59 = vpop.f32.mrf.mxu1 }
 0x1df   : > { %v805_v27 = vadd.f32 %v804_v59, %v2873_v3  ;;  %v2959_v3 = vpop.permute.xlu2 %1318  ;;  %v2970_v51 = vpop.permute.xlu1 %1343 }
 0x1e1   : > { %v826_v42 = vmax.f32 %v805_v27, 0.0 }
 0x1e6   : > { %v806_v2 = vpop.f32.mrf.mxu1 }
 0x1e7   : > { %v807_v22 = vadd.f32 %v806_v2, %v2879_v8  ;;  %v825_v8 = vmax.f32 %v802_v36, 0.0  ;;  %v2965_v50 = vpop.permute.xlu2 %1333  ;;  %v2988_v59 = vpop.permute.xlu1 %1358 }
 0x1e9   : > { %v827_v37 = vmax.f32 %v807_v22, 0.0 }
 0x1ee   : > { %v809_v11 = vpop.f32.mrf.mxu1 }
 0x1ef   : > { %v810_v15 = vadd.f32 %v809_v11, %v2877_v5  ;;  %v800_v5 = vadd.f32 %v799_v53, %v2871_v0  ;;  %v2963_v0 = vpop.permute.xlu0 %1323  ;;  %v3000_v11 = vpop.permute.xlu1 %1373 }
 0x1f1   : > { %v828_v30 = vmax.f32 %v810_v15, 0.0  ;;  %v824_v46 = vmax.f32 %v800_v5, 0.0  ;;  %v2179_v15 = vld [vmem:[%s3471_s6 + $0x8] sm:$0xff] }
 0x1f3   : > { %v867_v48 = vpack.c.bf16 %v825_v8, %v824_v46  ;;  %v2183_v46 = vld [vmem:[%s3471_s6 + $0x28] sm:$0xff] }
 0x1f6   : > { %v811_v18 = vpop.f32.mrf.mxu1 }
 0x1f7   : > { %v812_v24 = vadd.f32 %v811_v18, %v2881_v9  ;;  %v868_v9 = vpack.c.bf16 %v827_v37, %v826_v42  ;;  %v2975_v53 = vpop.permute.xlu0 %1338  ;;  %v2181_v18 = vld [vmem:[%s3471_s6 + $0x18] sm:$0xff]  ;;  %v3015_v27 = vpop.permute.xlu1 %1388  ;;  %v2182_v37 = vld [vmem:[%s3471_s6 + $0x20] sm:$0xff] }
 0x1f8   : > { %3494 = vst [vmem:[#allocation17_spill] sm:$0xff] %v3015_v27  ;;  %v3506_v27 = vmov 0  }
 0x1f9   : > { %v829_v34 = vmax.f32 %v812_v24, 0.0 }
 0x1fb   : > { %v869_v38 = vpack.c.bf16 %v829_v34, %v828_v30 }
 0x1fd   : > { %1158 = vmatpush.bf16.msrb.mxu0 %v869_v38  ;;  %2194 = vmatpush.bf16.msra.mxu2 %v869_v38 }
 0x1fe   : > { %2195 = vmatpush.bf16.msra.mxu3 %v869_v38  ;;  %v2189_v38 = vld [vmem:[%s3471_s6 + $0x58] sm:$0xff] }
 0x1ff   : > { %v3021_v36 = vpop.permute.xlu1 %1403 }
 0x200   : > { %3497 = vst [vmem:[#allocation20_spill] sm:$0xff] %v3021_v36 }
 0x201   : > { %1159 = vmatpush.bf16.msrb.mxu0 %v868_v9  ;;  %2196 = vmatpush.bf16.msra.mxu2 %v868_v9 }
 0x202   : > { %2197 = vmatpush.bf16.msra.mxu3 %v868_v9 }
 0x205   : > { %1160 = vmatpush.bf16.msrb.mxu0 %v867_v48  ;;  %2198 = vmatpush.bf16.msra.mxu2 %v867_v48 }
 0x206   : > { %2199 = vmatpush.bf16.msra.mxu3 %v867_v48 }
 0x207   : > { %v3033_v8 = vpop.permute.xlu1 %1418 }
 0x209   : > { %1161 = vmatpush.bf16.msrb.mxu0 %v866_v52  ;;  %2200 = vmatpush.bf16.msra.mxu2 %v866_v52 }
 0x20a   : > { %2201 = vmatpush.bf16.msra.mxu3 %v866_v52  ;;  %v2980_v52 = vpop.permute.xlu2 %1348 }
 0x20d   : > { %1162 = vmatpush.bf16.msrb.mxu0 %v2909_v40  ;;  %2202 = vmatpush.bf16.msra.mxu2 %v2909_v40 }
 0x20e   : > { %2203 = vmatpush.bf16.msra.mxu3 %v2909_v40  ;;  %v2178_v40 = vld [vmem:[%s3471_s6] sm:$0xff] }
 0x211   : > { %1163 = vmatpush.bf16.msrb.mxu0 %v2899_v29  ;;  %2204 = vmatpush.bf16.msra.mxu2 %v2899_v29 }
 0x212   : > { %2205 = vmatpush.bf16.msra.mxu3 %v2899_v29  ;;  %v2996_v29 = vpop.permute.xlu0 %1353  ;;  %v2998_v2 = vpop.permute.xlu2 %1363 }
 0x215   : > { %1164 = vmatpush.bf16.msrb.mxu0 %v2885_v16  ;;  %2206 = vmatpush.bf16.msra.mxu2 %v2885_v16 }
 0x216   : > { %2207 = vmatpush.bf16.msra.mxu3 %v2885_v16  ;;  %v2187_v16 = vld [vmem:[%s3471_s6 + $0x48] sm:$0xff] }
 0x219   : > { %1165 = vmatpush.bf16.msrb.mxu0 %v2875_v4  ;;  %2208 = vmatpush.bf16.msra.mxu2 %v2875_v4 }
 0x21a   : > { %2209 = vmatpush.bf16.msra.mxu3 %v2875_v4  ;;  %v3008_v22 = vpop.permute.xlu0 %1368  ;;  %v2188_v4 = vld [vmem:[%s3471_s6 + $0x50] sm:$0xff]  ;;  %v3013_v24 = vpop.permute.xlu2 %1378 }
 0x21b   : > { %3493 = vst [vmem:[#allocation16_spill] sm:$0xff] %v3013_v24 }
 0x21c   : > { %1166 = vmatmul.bf16.vlgmr.msrb.gmra.mxu0 %v2178_v40  ;;  %1176 = vmatmul.bf16.vlgmr.msra.gmra.mxu2 %v2180_v58  ;;  %v2190_v40 = vld [vmem:[%s3471_s6 + $0x60] sm:$0xff]  ;;  %v3045_v58 = vpop.permute.xlu1 %1433 }
 0x21d   : > { %1211 = vmatmul.bf16.vlgmr.msra.gmra.mxu3 %v2187_v16 }
 0x222   : > { %v3017_v30 = vpop.permute.xlu0 %1383  ;;  %v3019_v34 = vpop.permute.xlu2 %1393 }
 0x223   : > { %3495 = vst [vmem:[#allocation18_spill] sm:$0xff] %v3017_v30 }
 0x224   : > { %3496 = vst [vmem:[#allocation19_spill] sm:$0xff] %v3019_v34 }
 0x22a   : > { %v3029_v5 = vpop.permute.xlu0 %1398  ;;  %v3031_v42 = vpop.permute.xlu2 %1408 }
 0x22b   : > { %3498 = vst [vmem:[#allocation21_spill] sm:$0xff] %v3029_v5  ;;  %v2192_v5 = vld [vmem:[%s3471_s6 + $0x70] sm:$0xff] }
 0x22c   : > { %1171 = vmatmul.bf16.gmra.mxu0 %v2179_v15  ;;  %1181 = vmatmul.bf16.gmra.mxu2 %v2181_v18  ;;  %v3051_v18 = vpop.permute.xlu1 %1448 }
 0x22d   : > { %1216 = vmatmul.bf16.gmra.mxu3 %v2188_v4  ;;  %3499 = vst [vmem:[#allocation22_spill] sm:$0xff] %v3051_v18  ;;  %v2184_v4 = vld [vmem:[%s3471_s6 + $0x30] sm:$0xff] }
 0x232   : > { %v3035_v9 = vpop.permute.xlu0 %1413  ;;  %v3040_v48 = vpop.permute.xlu2 %1423 }
 0x23a   : > { %v3047_v16 = vpop.permute.xlu0 %1428  ;;  %v3049_v15 = vpop.permute.xlu2 %1438 }
 0x23c   : > { %1186 = vmatmul.bf16.gmra.mxu2 %v2182_v37  ;;  %v2191_v37 = vld [vmem:[%s3471_s6 + $0x68] sm:$0xff] }
 0x23d   : > { %1221 = vmatmul.bf16.gmra.mxu3 %v2189_v38 }
 0x242   : > { %v3059_v38 = vpop.permute.xlu0 %1443  ;;  %v3061_v7 = vpop.permute.xlu2 %1453 }
 0x243   : > { %3500 = vst [vmem:[#allocation23_spill] sm:$0xff] %v3061_v7 }
 0x24a   : > { %v3067_v36 = vpop.permute.xlu2 %1468 }
 0x24b   : > { %3503 = vst [vmem:[#allocation26_spill] sm:$0xff] %v3067_v36  ;;  %v2186_v36 = vld [vmem:[%s3471_s6 + $0x40] sm:$0xff] }
 0x24c   : > { %1191 = vmatmul.bf16.gmra.mxu2 %v2183_v46  ;;  %v3063_v46 = vpop.permute.xlu1 %1463 }
 0x24d   : > { %1226 = vmatmul.bf16.gmra.mxu3 %v2190_v40  ;;  %3501 = vst [vmem:[#allocation24_spill] sm:$0xff] %v3063_v46  ;;  %v3065_v40 = vpop.permute.xlu0 %1458  ;;  %v2193_v46 = vld [vmem:[%s3471_s6 + $0x78] sm:$0xff] }
 0x24e   : > { %3502 = vst [vmem:[#allocation25_spill] sm:$0xff] %v3065_v40  ;;  %v1279_v40 = vld [vmem:[%s440_s10] sm:$0x1] }
 0x24f   : > { %vm1280_vm2 = vcmp.eq.s32.totalorder %v1279_v40, 1  ;;  %vm1508_vm3 = vcmp.eq.s32.totalorder %v1279_v40, 0 }
 0x250   : > { %v1313_v14 = vsel %vm1280_vm2, 1, %v3506_v27  ;;  %v1541_v47 = vsel %vm1508_vm3, 1, %v3506_v27 }
 0x251   : > { %v1314_v7 = vperm.slane %v1313_v14, 0  ;;  %v1542_v21 = vperm.slane %v1541_v47, 0 }
 0x253   : > { %vm3115_vm4 = vcmp.eq.s32.totalorder %v1314_v7, 1  ;;  %vm3121_vm5 = vcmp.eq.s32.totalorder %v1542_v21, 1 }
 0x254   : > { %v1547_v55 = vpop.permute.xlu1 %1546 }
 0x25c   : > { %1196 = vmatmul.bf16.gmra.mxu2 %v2184_v4  ;;  %v3075_v4 = vpop.permute.xlu0 %1473  ;;  %v3077_v45 = vpop.permute.xlu1 %1561 }
 0x25d   : > { %1231 = vmatmul.bf16.gmra.mxu3 %v2191_v37  ;;  %3504 = vst [vmem:[#allocation27_spill] sm:$0xff] %v3075_v4  ;;  %v1552_v37 = vpop.permute.xlu2 %1551 }
 0x264   : > { %v3082_v49 = vpop.permute.xlu0 %1556  ;;  %v3087_v26 = vpop.permute.xlu1 %1576 }
 0x265   : > { %v1567_v34 = vpop.permute.xlu2 %1566 }
 0x26c   : > { %1201 = vmatmul.bf16.gmra.mxu2 %v2185_v35  ;;  %v3090_v35 = vpop.permute.xlu0 %1571  ;;  %v3095_v4 = vpop.permute.xlu1 %1591 }
 0x26d   : > { %1236 = vmatmul.bf16.gmra.mxu3 %v2192_v5  ;;  %v3092_v5 = vpop.permute.xlu2 %1581 }
 0x274   : > { %v3100_v54 = vpop.permute.xlu0 %1586 }
 0x27c   : > { %1206 = vmatmul.bf16.gmra.mxu2 %v2186_v36  ;;  %v3102_v36 = vpop.permute.xlu2 %1596  ;;  %v3108_v30 = vpop.permute.xlu0 %1601 }
 0x27d   : > { %1241 = vmatmul.bf16.gmra.mxu3 %v2193_v46  ;;  %v3104_v46 = vpop.permute.xlu1 %1606 }
 0x27e   : > { %3505 = vst [vmem:[#allocation28_spill] sm:$0xff] %v3104_v46 }
 0x284   : > { %v3110_v43 = vpop.permute.xlu2 %1611  ;;  %v3134_v21 = vpop.permute.xlu0 %1616 }
 0x285   : > { %3507 = vst [vmem:[#allocation29_spill] sm:$0xff] %v3110_v43  ;;  %v3119_v40 = vpop.permute.xlu1 %1621 }
 0x286   : > { %3510 = vst [vmem:[#allocation30_spill] sm:$0xff] %v3119_v40 }
 0x299   : > { %v1167_v18 = vpop.f32.mrf.mxu0 }
 0x29a   : > { %v1168_v24 = vadd.f32 %v1167_v18, %v2887_v17 }
 0x29c   : > { %v1247_v14 = vmax.f32 %v1168_v24, 0.0 }
 0x29e   : > { %v1476_v47 = vsel %vm3115_vm4, %v2959_v3, %v1247_v14 }
 0x29f   : > { %v1704_v27 = vsel %vm3121_vm5, %v1547_v55, %v1476_v47  ;;  %v1177_v43 = vpop.f32.mrf.mxu2  ;;  %v3138_v55 = vpop.permute.xlu2 %1626 }
 0x2a0   : > { %1736 = vst [vmem:[%s3130_s13] sm:$0xff] %v1704_v27  ;;  %v1178_v7 = vadd.f32 %v1177_v43, %v2891_v20  ;;  %v1212_v17 = vpop.f32.mrf.mxu3  ;;  %v1637_v20 = vpop.permute.xlu1 %1636 }
 0x2a1   : > { %v1213_v24 = vadd.f32 %v1212_v17, %v2927_v61  ;;  %v1169_v18 = vpop.f32.mrf.mxu0 }
 0x2a2   : > { %v1251_v3 = vmax.f32 %v1178_v7, 0.0  ;;  %v1170_v14 = vadd.f32 %v1169_v18, %v2883_v12 }
 0x2a3   : > { %v1265_v47 = vmax.f32 %v1213_v24, 0.0 }
 0x2a4   : > { %v1480_v27 = vsel %vm3115_vm4, %v2975_v53, %v1251_v3  ;;  %v1248_v40 = vmax.f32 %v1170_v14, 0.0 }
 0x2a5   : > { %v1708_v43 = vsel %vm3121_vm5, %v1567_v34, %v1480_v27  ;;  %v1494_v61 = vsel %vm3115_vm4, %v3031_v42, %v1265_v47  ;;  %v3161_v47 = vpop.permute.xlu0 %1631 }
 0x2a6   : > { %1740 = vst [vmem:[%s3130_s13 + $0x20] sm:$0xff] %v1708_v43  ;;  %v1722_v12 = vsel %vm3121_vm5, %v1637_v20, %v1494_v61  ;;  %v1477_v7 = vsel %vm3115_vm4, %v2963_v0, %v1248_v40 }
 0x2a7   : > { %1754 = vst [vmem:[%s3130_s13 + $0x90] sm:$0xff] %v1722_v12  ;;  %v1705_v53 = vsel %vm3121_vm5, %v1552_v37, %v1477_v7  ;;  %v1179_v17 = vpop.f32.mrf.mxu2  ;;  %v1642_v27 = vpop.permute.xlu2 %1641  ;;  %v1869_v13 = vld [vmem:[%s3130_s13] sm:$0xff] (%p2430_p6) }
 0x2a8   : > { %1737 = vst [vmem:[%s3130_s13 + $0x8] sm:$0xff] %v1705_v53  ;;  %v1180_v34 = vadd.f32 %v1179_v17, %v2895_v25  ;;  %v1214_v24 = vpop.f32.mrf.mxu3 }
 0x2a9   : > { %v1215_v42 = vadd.f32 %v1214_v24, %v2925_v57  ;;  %v1172_v18 = vpop.f32.mrf.mxu0  ;;  %1870 = vst [vmem:[%s3380_s22] sm:$0xff] (%p2430_p6), %v1869_v13 }
 0x2aa   : > { %v1252_v3 = vmax.f32 %v1180_v34, 0.0  ;;  %v1173_v14 = vadd.f32 %v1172_v18, %v2889_v19 }
 0x2ab   : > { %v1266_v0 = vmax.f32 %v1215_v42, 0.0 }
 0x2ac   : > { %v1481_v37 = vsel %vm3115_vm4, %v2970_v51, %v1252_v3  ;;  %v1249_v40 = vmax.f32 %v1173_v14, 0.0 }
 0x2ad   : > { %v1709_v25 = vsel %vm3121_vm5, %v3090_v35, %v1481_v37  ;;  %v1495_v57 = vsel %vm3115_vm4, %v3035_v9, %v1266_v0 }
 0x2ae   : > { %1741 = vst [vmem:[%s3130_s13 + $0x28] sm:$0xff] %v1709_v25  ;;  %v1723_v19 = vsel %vm3121_vm5, %v1642_v27, %v1495_v57  ;;  %v1478_v20 = vsel %vm3115_vm4, %v2961_v60, %v1249_v40 }
 0x2af   : > { %1755 = vst [vmem:[%s3130_s13 + $0x98] sm:$0xff] %v1723_v19  ;;  %v1706_v51 = vsel %vm3121_vm5, %v3082_v49, %v1478_v20  ;;  %v1182_v43 = vpop.f32.mrf.mxu2  ;;  %v1647_v49 = vpop.permute.xlu0 %1646  ;;  %v1871_v46 = vld [vmem:[%s3130_s13 + $0x8] sm:$0xff] (%p2430_p6) }
 0x2b0   : > { %1738 = vst [vmem:[%s3130_s13 + $0x10] sm:$0xff] %v1706_v51  ;;  %v1183_v35 = vadd.f32 %v1182_v43, %v2901_v31  ;;  %v1217_v9 = vpop.f32.mrf.mxu3  ;;  %v1657_v19 = vpop.permute.xlu2 %1656 }
 0x2b1   : > { %v1218_v61 = vadd.f32 %v1217_v9, %v2929_v56  ;;  %v1174_v12 = vpop.f32.mrf.mxu0  ;;  %1872 = vst [vmem:[%s3380_s22 + $0x20] sm:$0xff] (%p2430_p6), %v1871_v46 }
 0x2b2   : > { %v1253_v7 = vmax.f32 %v1183_v35, 0.0  ;;  %v1175_v53 = vadd.f32 %v1174_v12, %v2893_v23 }
 0x2b3   : > { %v1267_v60 = vmax.f32 %v1218_v61, 0.0 }
 0x2b4   : > { %v1482_v17 = vsel %vm3115_vm4, %v2980_v52, %v1253_v7  ;;  %v1250_v34 = vmax.f32 %v1175_v53, 0.0 }
 0x2b5   : > { %v1710_v24 = vsel %vm3121_vm5, %v3087_v26, %v1482_v17  ;;  %v1496_v31 = vsel %vm3115_vm4, %v3033_v8, %v1267_v60 }
 0x2b6   : > { %1742 = vst [vmem:[%s3130_s13 + $0x30] sm:$0xff] %v1710_v24  ;;  %v1724_v23 = vsel %vm3121_vm5, %v1647_v49, %v1496_v31  ;;  %v1479_v56 = vsel %vm3115_vm4, %v2965_v50, %v1250_v34  ;;  %v1652_v50 = vpop.permute.xlu1 %1651 }
 0x2b7   : > { %1756 = vst [vmem:[%s3130_s13 + $0xa0] sm:$0xff] %v1724_v23  ;;  %v1707_v52 = vsel %vm3121_vm5, %v3077_v45, %v1479_v56  ;;  %v1184_v26 = vpop.f32.mrf.mxu2  ;;  %v1662_v61 = vpop.permute.xlu0 %1661 }
 0x2b8   : > { %1739 = vst [vmem:[%s3130_s13 + $0x18] sm:$0xff] %v1707_v52  ;;  %v1185_v42 = vadd.f32 %v1184_v26, %v2897_v28  ;;  %v1219_v8 = vpop.f32.mrf.mxu3  ;;  %v1672_v52 = vpop.permute.xlu2 %1671 }
 0x2b9   : > { %v1220_v18 = vadd.f32 %v1219_v8, %v2933_v63  ;;  %v3513_v8 = vld [vmem:[#allocation10_spill] sm:$0xff] }
 0x2ba   : > { %v1254_v3 = vmax.f32 %v1185_v42, 0.0 }
 0x2bb   : > { %v1268_v14 = vmax.f32 %v1220_v18, 0.0 }
 0x2bc   : > { %v1483_v0 = vsel %vm3115_vm4, %v2996_v29, %v1254_v3 }
 0x2bd   : > { %v1711_v37 = vsel %vm3121_vm5, %v3092_v5, %v1483_v0  ;;  %v1497_v45 = vsel %vm3115_vm4, %v3040_v48, %v1268_v14  ;;  %v3514_v0 = vld [vmem:[#allocation16_spill] sm:$0xff] }
 0x2be   : > { %1743 = vst [vmem:[%s3130_s13 + $0x38] sm:$0xff] %v1711_v37  ;;  %v1725_v28 = vsel %vm3121_vm5, %v1652_v50, %v1497_v45  ;;  %v1667_v34 = vpop.permute.xlu1 %1666  ;;  %v3516_v45 = vld [vmem:[#allocation22_spill] sm:$0xff] }
 0x2bf   : > { %1757 = vst [vmem:[%s3130_s13 + $0xa8] sm:$0xff] %v1725_v28  ;;  %v1187_v63 = vpop.f32.mrf.mxu2  ;;  %v1677_v50 = vpop.permute.xlu0 %1676 }
 0x2c0   : > { %v1188_v40 = vadd.f32 %v1187_v63, %v2903_v32  ;;  %v1222_v29 = vpop.f32.mrf.mxu3 }
 0x2c1   : > { %v1223_v27 = vadd.f32 %v1222_v29, %v2931_v62 }
 0x2c2   : > { %v1255_v25 = vmax.f32 %v1188_v40, 0.0  ;;  %v3517_v40 = vld [vmem:[#allocation5_spill] sm:$0xff] }
 0x2c3   : > { %v1269_v57 = vmax.f32 %v1223_v27, 0.0 }
 0x2c4   : > { %v1484_v5 = vsel %vm3115_vm4, %v2988_v59, %v1255_v25  ;;  %v3518_v25 = vld [vmem:[#allocation12_spill] sm:$0xff] }
 0x2c5   : > { %v1712_v48 = vsel %vm3121_vm5, %v3100_v54, %v1484_v5  ;;  %v1498_v20 = vsel %vm3115_vm4, %v3047_v16, %v1269_v57 }
 0x2c6   : > { %1744 = vst [vmem:[%s3130_s13 + $0x40] sm:$0xff] %v1712_v48  ;;  %v1726_v32 = vsel %vm3121_vm5, %v1657_v19, %v1498_v20  ;;  %v3519_v48 = vld [vmem:[#allocation18_spill] sm:$0xff] }
 0x2c7   : > { %1758 = vst [vmem:[%s3130_s13 + $0xb0] sm:$0xff] %v1726_v32  ;;  %v1189_v62 = vpop.f32.mrf.mxu2  ;;  %v1682_v32 = vpop.permute.xlu1 %1681 }
 0x2c8   : > { %v1190_v51 = vadd.f32 %v1189_v62, %v2907_v39  ;;  %v1224_v59 = vpop.f32.mrf.mxu3  ;;  %v3520_v62 = vld [vmem:[#allocation29_spill] sm:$0xff] }
 0x2c9   : > { %v1225_v43 = vadd.f32 %v1224_v59, %v2935_v1  ;;  %v3521_v59 = vld [vmem:[#allocation23_spill] sm:$0xff] }
 0x2ca   : > { %v1256_v35 = vmax.f32 %v1190_v51, 0.0 }
 0x2cb   : > { %v1270_v9 = vmax.f32 %v1225_v43, 0.0 }
 0x2cc   : > { %v1485_v54 = vsel %vm3115_vm4, %v2998_v2, %v1256_v35 }
 0x2cd   : > { %v1713_v16 = vsel %vm3121_vm5, %v3095_v4, %v1485_v54  ;;  %v1499_v12 = vsel %vm3115_vm4, %v3045_v58, %v1270_v9  ;;  %v3522_v54 = vld [vmem:[#allocation6_spill] sm:$0xff] }
 0x2ce   : > { %1745 = vst [vmem:[%s3130_s13 + $0x48] sm:$0xff] %v1713_v16  ;;  %v1727_v39 = vsel %vm3121_vm5, %v1662_v61, %v1499_v12  ;;  %v3523_v12 = vld [vmem:[#allocation11_spill] sm:$0xff] }
 0x2cf   : > { %1759 = vst [vmem:[%s3130_s13 + $0xb8] sm:$0xff] %v1727_v39  ;;  %v1192_v1 = vpop.f32.mrf.mxu2 }
 0x2d0   : > { %v1193_v7 = vadd.f32 %v1192_v1, %v2905_v33  ;;  %v1227_v2 = vpop.f32.mrf.mxu3 }
 0x2d1   : > { %v1228_v53 = vadd.f32 %v1227_v2, %v2939_v10  ;;  %v3524_v2 = vld [vmem:[#allocation17_spill] sm:$0xff] }
 0x2d2   : > { %v1257_v60 = vmax.f32 %v1193_v7, 0.0 }
 0x2d3   : > { %v1271_v17 = vmax.f32 %v1228_v53, 0.0 }
 0x2d4   : > { %v1486_v4 = vsel %vm3115_vm4, %v3008_v22, %v1257_v60  ;;  %v1687_v60 = vpop.permute.xlu2 %1686 }
 0x2d5   : > { %v1714_v58 = vsel %vm3121_vm5, %v3102_v36, %v1486_v4  ;;  %v1500_v49 = vsel %vm3115_vm4, %v3049_v15, %v1271_v17  ;;  %v3525_v4 = vld [vmem:[#allocation25_spill] sm:$0xff] }
 0x2d6   : > { %1746 = vst [vmem:[%s3130_s13 + $0x50] sm:$0xff] %v1714_v58  ;;  %v1728_v33 = vsel %vm3121_vm5, %v1667_v34, %v1500_v49 }
 0x2d7   : > { %1760 = vst [vmem:[%s3130_s13 + $0xc0] sm:$0xff] %v1728_v33  ;;  %v1194_v10 = vpop.f32.mrf.mxu2  ;;  %v3526_v33 = vld [vmem:[#allocation8_spill] sm:$0xff] }
 0x2d8   : > { %v1195_v24 = vadd.f32 %v1194_v10, %v2911_v41  ;;  %v1229_v22 = vpop.f32.mrf.mxu3 }
 0x2d9   : > { %v1230_v31 = vadd.f32 %v1229_v22, %v2937_v6  ;;  %v3527_v22 = vld [vmem:[#allocation13_spill] sm:$0xff] }
 0x2da   : > { %v1258_v23 = vmax.f32 %v1195_v24, 0.0 }
 0x2db   : > { %v1272_v56 = vmax.f32 %v1230_v31, 0.0 }
 0x2dc   : > { %v1487_v36 = vsel %vm3115_vm4, %v3000_v11, %v1258_v23 }
 0x2dd   : > { %v1715_v15 = vsel %vm3121_vm5, %v3108_v30, %v1487_v36  ;;  %v1501_v26 = vsel %vm3115_vm4, %v3059_v38, %v1272_v56  ;;  %v3515_v38 = vld [vmem:[#allocation28_spill] sm:$0xff]  ;;  %v3528_v36 = vld [vmem:[#allocation19_spill] sm:$0xff] }
 0x2de   : > { %1747 = vst [vmem:[%s3130_s13 + $0x58] sm:$0xff] %v1715_v15  ;;  %v1729_v41 = vsel %vm3121_vm5, %v1672_v52, %v1501_v26  ;;  %v1692_v52 = vpop.permute.xlu0 %1691  ;;  %v3529_v15 = vld [vmem:[#allocation30_spill] sm:$0xff] }
 0x2df   : > { %1761 = vst [vmem:[%s3130_s13 + $0xc8] sm:$0xff] %v1729_v41  ;;  %v1197_v6 = vpop.f32.mrf.mxu2  ;;  %v3530_v41 = vld [vmem:[#allocation24_spill] sm:$0xff] }
 0x2e0   : > { %v1198_v42 = vadd.f32 %v1197_v6, %v2915_v44  ;;  %v1232_v11 = vpop.f32.mrf.mxu3 }
 0x2e1   : > { %v1233_v18 = vadd.f32 %v1232_v11, %v3513_v8  ;;  %v3531_v8 = vld [vmem:[#allocation7_spill] sm:$0xff] }
 0x2e2   : > { %v1259_v3 = vmax.f32 %v1198_v42, 0.0 }
 0x2e3   : > { %v1273_v14 = vmax.f32 %v1233_v18, 0.0 }
 0x2e4   : > { %v1488_v30 = vsel %vm3115_vm4, %v3514_v0, %v1259_v3 }
 0x2e5   : > { %v1716_v37 = vsel %vm3121_vm5, %v3515_v38, %v1488_v30  ;;  %v1502_v28 = vsel %vm3115_vm4, %v3516_v45, %v1273_v14  ;;  %v3532_v14 = vld [vmem:[#allocation15_spill] sm:$0xff]  ;;  %v3533_v38 = vld [vmem:[#allocation21_spill] sm:$0xff]  ;;  %v1697_v45 = vpop.permute.xlu1 %1696 }
 0x2e6   : > { %1748 = vst [vmem:[%s3130_s13 + $0x60] sm:$0xff] %v1716_v37  ;;  %v1730_v44 = vsel %vm3121_vm5, %v1677_v50, %v1502_v28 }
 0x2e7   : > { %1762 = vst [vmem:[%s3130_s13 + $0xd0] sm:$0xff] %v1730_v44  ;;  %v1199_v63 = vpop.f32.mrf.mxu2  ;;  %v3534_v44 = vld [vmem:[#allocation26_spill] sm:$0xff] }
 0x2e8   : > { %v1200_v29 = vadd.f32 %v1199_v63, %v3517_v40  ;;  %v1234_v27 = vpop.f32.mrf.mxu3 }
 0x2e9   : > { %v1235_v57 = vadd.f32 %v1234_v27, %v3518_v25  ;;  %v3535_v27 = vld [vmem:[#allocation9_spill] sm:$0xff] }
 0x2ea   : > { %v1260_v5 = vmax.f32 %v1200_v29, 0.0 }
 0x2eb   : > { %v1274_v19 = vmax.f32 %v1235_v57, 0.0 }
 0x2ec   : > { %v1489_v20 = vsel %vm3115_vm4, %v3519_v48, %v1260_v5  ;;  %v3536_v5 = vld [vmem:[#allocation14_spill] sm:$0xff] }
 0x2ed   : > { %v1717_v51 = vsel %vm3121_vm5, %v3520_v62, %v1489_v20  ;;  %v1503_v43 = vsel %vm3115_vm4, %v3521_v59, %v1274_v19  ;;  %v1702_v62 = vpop.permute.xlu2 %1701  ;;  %v3538_v59 = vld [vmem:[#allocation27_spill] sm:$0xff] }
 0x2ee   : > { %1749 = vst [vmem:[%s3130_s13 + $0x68] sm:$0xff] %v1717_v51  ;;  %v1731_v35 = vsel %vm3121_vm5, %v1682_v32, %v1503_v43  ;;  %v3537_v32 = vld [vmem:[#allocation20_spill] sm:$0xff] }
 0x2ef   : > { %1763 = vst [vmem:[%s3130_s13 + $0xd8] sm:$0xff] %v1731_v35  ;;  %v1202_v9 = vpop.f32.mrf.mxu2 }
 0x2f0   : > { %v1203_v61 = vadd.f32 %v1202_v9, %v3522_v54  ;;  %v1237_v16 = vpop.f32.mrf.mxu3  ;;  %v1875_v9 = vld [vmem:[%s3130_s13 + $0x18] sm:$0xff] (%p2430_p6)  ;;  %v1877_v54 = vld [vmem:[%s3130_s13 + $0x20] sm:$0xff] (%p2430_p6) }
 0x2f1   : > { %v1238_v39 = vadd.f32 %v1237_v16, %v3523_v12  ;;  %1876 = vst [vmem:[%s3380_s22 + $0x60] sm:$0xff] (%p2430_p6), %v1875_v9  ;;  %v1881_v16 = vld [vmem:[%s3130_s13 + $0x30] sm:$0xff] (%p2430_p6)  ;;  %v1883_v12 = vld [vmem:[%s3130_s13 + $0x38] sm:$0xff] (%p2430_p6) }
 0x2f2   : > { %v1261_v1 = vmax.f32 %v1203_v61, 0.0  ;;  %v1879_v61 = vld [vmem:[%s3130_s13 + $0x28] sm:$0xff] (%p2430_p6)  ;;  %1878 = vst [vmem:[%s3380_s22 + $0x80] sm:$0xff] (%p2430_p6), %v1877_v54 }
 0x2f3   : > { %v1275_v7 = vmax.f32 %v1238_v39, 0.0  ;;  %1880 = vst [vmem:[%s3380_s22 + $0xa0] sm:$0xff] (%p2430_p6), %v1879_v61  ;;  %v1885_v39 = vld [vmem:[%s3130_s13 + $0x40] sm:$0xff] (%p2430_p6) }
 0x2f4   : > { %v1490_v53 = vsel %vm3115_vm4, %v3524_v2, %v1261_v1  ;;  %1882 = vst [vmem:[%s3380_s22 + $0xc0] sm:$0xff] (%p2430_p6), %v1881_v16  ;;  %v1887_v1 = vld [vmem:[%s3130_s13 + $0x48] sm:$0xff] (%p2430_p6)  ;;  %v1891_v2 = vld [vmem:[%s3130_s13 + $0x58] sm:$0xff] (%p2430_p6) }
 0x2f5   : > { %v1718_v17 = vsel %vm3121_vm5, %v3134_v21, %v1490_v53  ;;  %v1504_v34 = vsel %vm3115_vm4, %v3525_v4, %v1275_v7  ;;  %1884 = vst [vmem:[%s3380_s22 + $0xe0] sm:$0xff] (%p2430_p6), %v1883_v12  ;;  %v1889_v7 = vld [vmem:[%s3130_s13 + $0x50] sm:$0xff] (%p2430_p6)  ;;  %v1893_v53 = vld [vmem:[%s3130_s13 + $0x60] sm:$0xff] (%p2430_p6) }
 0x2f6   : > { %1750 = vst [vmem:[%s3130_s13 + $0x70] sm:$0xff] %v1718_v17  ;;  %v1732_v58 = vsel %vm3121_vm5, %v1687_v60, %v1504_v34  ;;  %v1895_v60 = vld [vmem:[%s3130_s13 + $0x68] sm:$0xff] (%p2430_p6) }
 0x2f7   : > { %1764 = vst [vmem:[%s3130_s13 + $0xe0] sm:$0xff] %v1732_v58  ;;  %v1204_v49 = vpop.f32.mrf.mxu2 }
 0x2f8   : > { %v1205_v10 = vadd.f32 %v1204_v49, %v3526_v33  ;;  %v1239_v24 = vpop.f32.mrf.mxu3  ;;  %1886 = vst [vmem:[%s3380_s22 + $0x100] sm:$0xff] (%p2430_p6), %v1885_v39  ;;  %v1905_v49 = vld [vmem:[%s3130_s13 + $0x90] sm:$0xff] (%p2430_p6)  ;;  %v1907_v33 = vld [vmem:[%s3130_s13 + $0x98] sm:$0xff] (%p2430_p6) }
 0x2f9   : > { %v1240_v31 = vadd.f32 %v1239_v24, %v3527_v22  ;;  %1888 = vst [vmem:[%s3380_s22 + $0x120] sm:$0xff] (%p2430_p6), %v1887_v1  ;;  %v1911_v24 = vld [vmem:[%s3130_s13 + $0xa8] sm:$0xff] (%p2430_p6)  ;;  %v1913_v22 = vld [vmem:[%s3130_s13 + $0xb0] sm:$0xff] (%p2430_p6) }
 0x2fa   : > { %v1262_v23 = vmax.f32 %v1205_v10, 0.0  ;;  %1890 = vst [vmem:[%s3380_s22 + $0x140] sm:$0xff] (%p2430_p6), %v1889_v7  ;;  %v1909_v10 = vld [vmem:[%s3130_s13 + $0xa0] sm:$0xff] (%p2430_p6) }
 0x2fb   : > { %v1276_v56 = vmax.f32 %v1240_v31, 0.0  ;;  %1892 = vst [vmem:[%s3380_s22 + $0x160] sm:$0xff] (%p2430_p6), %v1891_v2  ;;  %v1915_v31 = vld [vmem:[%s3130_s13 + $0xb8] sm:$0xff] (%p2430_p6) }
 0x2fc   : > { %v1491_v21 = vsel %vm3115_vm4, %v3528_v36, %v1262_v23  ;;  %1894 = vst [vmem:[%s3380_s22 + $0x180] sm:$0xff] (%p2430_p6), %v1893_v53  ;;  %v1917_v23 = vld [vmem:[%s3130_s13 + $0xc0] sm:$0xff] (%p2430_p6)  ;;  %v1921_v36 = vld [vmem:[%s3130_s13 + $0xd0] sm:$0xff] (%p2430_p6) }
 0x2fd   : > { %v1719_v26 = vsel %vm3121_vm5, %v3529_v15, %v1491_v21  ;;  %v1505_v6 = vsel %vm3115_vm4, %v3530_v41, %v1276_v56  ;;  %v1897_v17 = vld [vmem:[%s3130_s13 + $0x70] sm:$0xff] (%p2430_p6)  ;;  %1896 = vst [vmem:[%s3380_s22 + $0x1a0] sm:$0xff] (%p2430_p6), %v1895_v60  ;;  %v1919_v56 = vld [vmem:[%s3130_s13 + $0xc8] sm:$0xff] (%p2430_p6)  ;;  %v1923_v21 = vld [vmem:[%s3130_s13 + $0xd8] sm:$0xff] (%p2430_p6) }
 0x2fe   : > { %1751 = vst [vmem:[%s3130_s13 + $0x78] sm:$0xff] %v1719_v26  ;;  %v1733_v42 = vsel %vm3121_vm5, %v1692_v52, %v1505_v6  ;;  %v1925_v52 = vld [vmem:[%s3130_s13 + $0xe0] sm:$0xff] (%p2430_p6) }
 0x2ff   : > { %1765 = vst [vmem:[%s3130_s13 + $0xe8] sm:$0xff] %v1733_v42  ;;  %v1207_v11 = vpop.f32.mrf.mxu2 }
 0x300   : > { %v1208_v18 = vadd.f32 %v1207_v11, %v3531_v8  ;;  %v1242_v3 = vpop.f32.mrf.mxu3  ;;  %1898 = vst [vmem:[%s3380_s22 + $0x1c0] sm:$0xff] (%p2430_p6), %v1897_v17 }
 0x301   : > { %v1243_v0 = vadd.f32 %v1242_v3, %v3532_v14  ;;  %1906 = vst [vmem:[%s3380_s22 + $0x240] sm:$0xff] (%p2430_p6), %v1905_v49 }
 0x302   : > { %v1263_v30 = vmax.f32 %v1208_v18, 0.0  ;;  %1908 = vst [vmem:[%s3380_s22 + $0x260] sm:$0xff] (%p2430_p6), %v1907_v33 }
 0x303   : > { %v1277_v50 = vmax.f32 %v1243_v0, 0.0  ;;  %1910 = vst [vmem:[%s3380_s22 + $0x280] sm:$0xff] (%p2430_p6), %v1909_v10 }
 0x304   : > { %v1492_v37 = vsel %vm3115_vm4, %v3533_v38, %v1263_v30  ;;  %1912 = vst [vmem:[%s3380_s22 + $0x2a0] sm:$0xff] (%p2430_p6), %v1911_v24 }
 0x305   : > { %v1720_v28 = vsel %vm3121_vm5, %v3138_v55, %v1492_v37  ;;  %v1506_v63 = vsel %vm3115_vm4, %v3534_v44, %v1277_v50  ;;  %v1899_v4 = vld [vmem:[%s3130_s13 + $0x78] sm:$0xff] (%p2430_p6)  ;;  %1914 = vst [vmem:[%s3380_s22 + $0x2c0] sm:$0xff] (%p2430_p6), %v1913_v22 }
 0x306   : > { %1752 = vst [vmem:[%s3130_s13 + $0x80] sm:$0xff] %v1720_v28  ;;  %v1734_v40 = vsel %vm3121_vm5, %v1697_v45, %v1506_v63  ;;  %v1927_v15 = vld [vmem:[%s3130_s13 + $0xe8] sm:$0xff] (%p2430_p6) }
 0x307   : > { %1766 = vst [vmem:[%s3130_s13 + $0xf0] sm:$0xff] %v1734_v40  ;;  %v1209_v29 = vpop.f32.mrf.mxu2 }
 0x308   : > { %v1210_v25 = vadd.f32 %v1209_v29, %v3535_v27  ;;  %v1244_v57 = vpop.f32.mrf.mxu3  ;;  %1900 = vst [vmem:[%s3380_s22 + $0x1e0] sm:$0xff] (%p2430_p6), %v1899_v4 }
 0x309   : > { %v1245_v19 = vadd.f32 %v1244_v57, %v3536_v5  ;;  %1916 = vst [vmem:[%s3380_s22 + $0x2e0] sm:$0xff] (%p2430_p6), %v1915_v31 }
 0x30a   : > { %v1264_v48 = vmax.f32 %v1210_v25, 0.0  ;;  %1918 = vst [vmem:[%s3380_s22 + $0x300] sm:$0xff] (%p2430_p6), %v1917_v23 }
 0x30b   : > { %v1278_v20 = vmax.f32 %v1245_v19, 0.0  ;;  %1774 = sbr.rel (!%p2430_p6) target bundleno = 792 (0x318), region = 105  ;;  %1920 = vst [vmem:[%s3380_s22 + $0x320] sm:$0xff] (%p2430_p6), %v1919_v56 }
 0x30c   : > { %v1493_v55 = vsel %vm3115_vm4, %v3537_v32, %v1264_v48  ;;  %1922 = vst [vmem:[%s3380_s22 + $0x340] sm:$0xff] (%p2430_p6), %v1921_v36 }
 0x30d   : > { %v1721_v51 = vsel %vm3121_vm5, %v3161_v47, %v1493_v55  ;;  %v1507_v43 = vsel %vm3115_vm4, %v3538_v59, %v1278_v20  ;;  %v1873_v47 = vld [vmem:[%s3130_s13 + $0x10] sm:$0xff] (%p2430_p6)  ;;  %v1901_v34 = vld [vmem:[%s3130_s13 + $0x80] sm:$0xff] (%p2430_p6)  ;;  %1924 = vst [vmem:[%s3380_s22 + $0x360] sm:$0xff] (%p2430_p6), %v1923_v21 }
 0x30e   : > { %1753 = vst [vmem:[%s3130_s13 + $0x88] sm:$0xff] %v1721_v51  ;;  %v1735_v35 = vsel %vm3121_vm5, %v1702_v62, %v1507_v43  ;;  %v1929_v26 = vld [vmem:[%s3130_s13 + $0xf0] sm:$0xff] (%p2430_p6) }
 0x30f   : > { %1767 = vst [vmem:[%s3130_s13 + $0xf8] sm:$0xff] %v1735_v35 }
 0x310   : > { %1874 = vst [vmem:[%s3380_s22 + $0x40] sm:$0xff] %v1873_v47 }
 0x311   : > { %1902 = vst [vmem:[%s3380_s22 + $0x200] sm:$0xff] %v1901_v34 }
 0x312   : > { %1926 = vst [vmem:[%s3380_s22 + $0x380] sm:$0xff] %v1925_v52 }
 0x313   : > { %1928 = vst [vmem:[%s3380_s22 + $0x3a0] sm:$0xff] %v1927_v15 }
 0x314   : > { %1930 = vst [vmem:[%s3380_s22 + $0x3c0] sm:$0xff] %v1929_v26 }
 0x315   : > { %v1903_v58 = vld [vmem:[%s3130_s13 + $0x88] sm:$0xff] }
 0x316   : > { %1904 = vst [vmem:[%s3380_s22 + $0x220] sm:$0xff] %v1903_v58  ;;  %v1931_v41 = vld [vmem:[%s3130_s13 + $0xf8] sm:$0xff] }
 0x317   : > { %1932 = vst [vmem:[%s3380_s22 + $0x3e0] sm:$0xff] %v1931_v41 }
 0x318 PF: > { %s20_s19 = sadd.s32 1, %s2324_s19   ;;  %s3540_s23 = sld [smem:[#allocation4_spill]] }
 0x319   : > { %p17_p13 = scmp.ge.s32.totalorder %s20_s19, 10   ;;  %s3541_s13 = smov %s2304_s14 }
 0x31a   : > { %s3542_s14 = smov %s2438_s28  ;;  %s3543_s15 = smov %s2316_s17 }
 0x31b   : > { %s3544_s16 = smov %s2320_s18  ;;  %s3546_s18 = smov %s3552_s21 }
 0x31c   :  { %19 = sbr.rel (!%p17_p13) target bundleno = 6 (0x6), region = 177 }
 0x31e   : > { %s3545_s17 = smov %s3540_s23 }

</bundles_post_ra>
